<compile_context>
chip_gen: v7x
topology: tpu7x:2x2x1
jax: 0.10.0
libtpu: 0.0.40
codegen_flags: <defaults>
</compile_context>

<pallas_src>
import math

import numpy as np
import jax
import jax.numpy as jnp
from jax.experimental import pallas as pl
from jax.experimental.pallas import tpu as pltpu


# ---------------------------------------------------------------------------
# Host-side parameter packing
# ---------------------------------------------------------------------------
def _conv_banded(w_oihw, width, pad):
    """KxK conv weight (Cout,Cin,K,K) -> K banded matrices (W*Cin, W*Cout).

    Lane-direction 'same' padding is folded into the matrices (out-of-range
    columns are dropped), so the activations carry NO lane padding; only the
    row (sublane) direction needs zero rows around each image.
    """
    w = np.asarray(w_oihw, np.float32)
    Cout, Cin, KH, KW = w.shape
    mats = np.zeros((KH, width * Cin, width * Cout), np.float32)
    for di in range(KH):
        for dj in range(KW):
            blk = w[:, :, di, dj].T                      # (Cin, Cout)
            for j in range(width):
                s = j + dj - pad
                if 0 <= s < width:
                    mats[di, s * Cin:(s + 1) * Cin, j * Cout:(j + 1) * Cout] = blk
    return mats


def pack_parameters(raw, *, image_size, conv_features, kernel_size, output_size,
                    embed_dim, num_heads, batch):
    """Pack all module parameters / selection masks into one f32 slab."""
    K = kernel_size + 1
    pad = kernel_size // 2
    assert K == 2 * pad + 1, "packing assumes 'same' convolutions"
    H = W = image_size
    Cin, Cf = 3, conv_features
    assert image_size % output_size == 0
    pool = image_size // output_size
    Ho = Wo = output_size
    E = Cf * Ho * Wo
    assert E % num_heads == 0
    nh = num_heads
    Dh = E // nh
    B = batch
    kdim = embed_dim

    S = ((H + 2 * pad + 7) // 8) * 8        # 8-aligned per-batch row block
    PREF = 8                                # zero-row prefix (>= pad, 8-aligned)
    L = (B - 1) * S + H                     # rows of the batched conv output
    Lr = L - (pool - 1)                     # rows after row-direction pooling
    LW = (W - pool + 1) * Cf                # live lanes after lane pooling
    scale = 1.0 / math.sqrt(Dh)

    c1w = _conv_banded(raw["conv1_w"], W, pad)          # (K, W*Cin, W*Cf)
    c2w = _conv_banded(raw["conv2_w"], W, pad)          # (K, W*Cf,  W*Cf)
    c1b = np.tile(np.asarray(raw["conv1_b"], np.float32), W)[None, :]
    c2b = np.tile(np.asarray(raw["conv2_b"], np.float32), W)[None, :]

    # flatten(NCHW) column selection, pooled-row mask, per-batch row summation
    csel = np.zeros((LW, E), np.float32)
    pmask = np.zeros((Lr, E), np.float32)
    asum = np.zeros((B, Lr), np.float32)
    for c in range(Cf):
        for oi in range(Ho):
            for oj in range(Wo):
                f = c * Ho * Wo + oi * Wo + oj
                csel[oj * pool * Cf + c, f] = 1.0
                for b in range(B):
                    pmask[b * S + oi * pool, f] = 1.0
    for b in range(B):
        asum[b, b * S: b * S + H] = 1.0      # numpy clips past Lr for the last b

    # attention: q|v packed (scale folded into q), key proj augmented with bias
    in_b = np.asarray(raw["in_proj_b"], np.float32)
    wqv = np.concatenate([np.asarray(raw["q_w"], np.float32).T * scale,
                          np.asarray(raw["v_w"], np.float32).T], axis=1)     # (E,2E)
    bqv = np.concatenate([in_b[:E] * scale, in_b[2 * E:]])[None, :]          # (1,2E)
    wkaug = np.concatenate([np.asarray(raw["k_w"], np.float32),
                            in_b[E:2 * E, None]], axis=1)                    # (E,kdim+1)

    kmask = np.zeros((E, nh * B), np.float32)        # head mask for key columns
    vmask = np.zeros((nh * B, 2 * E), np.float32)    # head mask for value rows
    vsel = np.zeros((nh * B, B), np.float32)         # tiles qv rows per head
    bones = np.zeros((nh * B, nh * B), np.float32)   # per-head softmax denom sum
    for h in range(nh):
        for j in range(B):
            kmask[h * Dh:(h + 1) * Dh, h * B + j] = 1.0
            vmask[h * B + j, E + h * Dh: E + (h + 1) * Dh] = 1.0
            vsel[h * B + j, j] = 1.0
            for j2 in range(B):
                bones[h * B + j, h * B + j2] = 1.0
    wopad = np.zeros((2 * E, E), np.float32)         # out_proj reads the v-half lanes
    wopad[E:, :] = np.asarray(raw["out_w"], np.float32).T

    sections = [
        ("c1b", c1b), ("c2b", c2b),
        ("csel", csel), ("pmask", pmask), ("asum", asum),
        ("wqv", wqv), ("bqv", bqv),
        ("wkaug", wkaug), ("kmask", kmask),
        ("vsel", vsel), ("vmask", vmask), ("bones", bones),
        ("wopad", wopad), ("bo", np.asarray(raw["out_b"], np.float32)[None, :]),
        ("w1", np.asarray(raw["lin1_w"], np.float32).T),
        ("b1", np.asarray(raw["lin1_b"], np.float32)[None, :]),
        ("w2", np.asarray(raw["lin2_w"], np.float32).T),
        ("b2", np.asarray(raw["lin2_b"], np.float32)[None, :]),
    ]
    for t in range(K):
        sections.append((f"c1w{t}", c1w[t]))
        sections.append((f"c2w{t}", c2w[t]))

    lane_w = max(a.shape[1] for _, a in sections)
    offsets, blocks, cur = {}, [], 0
    for name, a in sections:
        a = np.asarray(a, np.float32)
        r, c = a.shape
        rp = ((r + 7) // 8) * 8                          # 8-row aligned sections
        blk = np.zeros((rp, lane_w), np.float32)
        blk[:r, :c] = a
        offsets[name] = (cur, r, c)
        blocks.append(blk)
        cur += rp
    slab = jnp.asarray(np.concatenate(blocks, axis=0))

    cfg = dict(B=B, H=H, W=W, K=K, pad=pad, Cin=Cin, Cf=Cf, pool=pool, Ho=Ho,
               E=E, Dh=Dh, nh=nh, kdim=kdim, S=S, PREF=PREF, L=L, Lr=Lr, LW=LW)
    return slab, offsets, cfg


# ---------------------------------------------------------------------------
# Fused forward kernel
# ---------------------------------------------------------------------------
def make_forward(offsets, cfg):
    B, H, W = cfg["B"], cfg["H"], cfg["W"]
    K, pad = cfg["K"], cfg["pad"]
    Cin, Cf = cfg["Cin"], cfg["Cf"]
    pool = cfg["pool"]
    E, nh = cfg["E"], cfg["nh"]
    S, PREF = cfg["S"], cfg["PREF"]
    L, Lr, LW = cfg["L"], cfg["Lr"], cfg["LW"]
    WCf = W * Cf
    base = PREF - pad
    f32 = jnp.float32

    def kernel(xin_ref, embk_ref, slab_ref, o_ref, xpad2_ref):
        def P(name):                                     # static slab slice
            start, r, c = offsets[name]
            return slab_ref[start:start + r, :c]

        # ---- zero only the pad-border rows of the conv2 input scratch (its
        #      interior is fully overwritten by conv1 output) — aligned stores
        xpad2_ref[0:PREF, :] = jnp.zeros((PREF, WCf), f32)
        for b in range(B):
            xpad2_ref[PREF + b * S + H: PREF + (b + 1) * S, :] = \
                jnp.zeros((S - H, WCf), f32)

        # ---- conv1 (3x3 "same") as banded MXU matmuls, batched across B ------
        acc1 = jnp.dot(xin_ref[base:base + L, :], P("c1w0"),
                       preferred_element_type=f32)
        for t in range(1, K):
            acc1 = acc1 + jnp.dot(xin_ref[base + t:base + t + L, :], P(f"c1w{t}"),
                                  preferred_element_type=f32)
        y1 = jnp.maximum(acc1 + P("c1b"), 0.0)           # (L, W*Cf)
        for b in range(B):                               # drop batch-boundary rows
            xpad2_ref[PREF + b * S: PREF + b * S + H, :] = y1[b * S: b * S + H, :]

        # ---- conv2 ------------------------------------------------------------
        acc2 = jnp.dot(xpad2_ref[base:base + L, :], P("c2w0"),
                       preferred_element_type=f32)
        for t in range(1, K):
            acc2 = acc2 + jnp.dot(xpad2_ref[base + t:base + t + L, :], P(f"c2w{t}"),
                                  preferred_element_type=f32)
        y2 = jnp.maximum(acc2 + P("c2b"), 0.0)           # (L, W*Cf)

        # ---- MaxPool2d(pool): shift-and-max over sublanes then lanes ----------
        ra = y2[0:Lr, :]
        for pi in range(1, pool):
            ra = jnp.maximum(ra, y2[pi:pi + Lr, :])
        rb = ra[:, 0:LW]
        for pj in range(1, pool):
            rb = jnp.maximum(rb, ra[:, pj * Cf: pj * Cf + LW])
        # (the module's ReLU after MaxPool2d is a no-op on non-negative inputs)

        # ---- flatten(NCHW) + per-batch pooled-row selection via 2 matmuls -----
        g = jnp.dot(rb, P("csel"), preferred_element_type=f32) * P("pmask")  # (Lr,E)
        yq = jnp.dot(P("asum"), g, preferred_element_type=f32)               # (B,E)

        # ---- cross multi-head attention (query=value=yq, key=embeddings) ------
        #      all heads batched via masked selection matmuls; q scale folded in
        qv = jnp.dot(yq, P("wqv"), preferred_element_type=f32) + P("bqv")    # (B,2E)
        q = qv[:, 0:E]
        kT = jnp.dot(P("wkaug"), embk_ref[...], preferred_element_type=f32)  # (E,nh*B)
        k2 = kT * P("kmask")
        s = jnp.dot(q, k2, preferred_element_type=f32)                       # (B,nh*B)
        s = s - jnp.max(s, axis=-1, keepdims=True)       # per-row const: per-head safe
        p = jnp.exp(s)
        den = jnp.dot(p, P("bones"), preferred_element_type=f32)             # head sums
        p = p * pl.reciprocal(den, approx=True)
        v2 = jnp.dot(P("vsel"), qv, preferred_element_type=f32) * P("vmask") # (nh*B,2E)
        cat = jnp.dot(p, v2, preferred_element_type=f32)                     # (B,2E)
        attn = jnp.dot(cat, P("wopad"), preferred_element_type=f32) + P("bo")  # (B,E)

        # ---- residual + MLP head ----------------------------------------------
        z = yq + attn
        h1 = jnp.maximum(jnp.dot(z, P("w1"), preferred_element_type=f32) + P("b1"),
                         0.0)
        logits = jnp.dot(h1, P("w2"), preferred_element_type=f32) + P("b2")  # (B,Cf)
        o_ref[...] = jax.nn.sigmoid(logits)

    def forward(image, embeddings, slab):
        # image (B,3,H,W) NCHW; embeddings (B,kdim).
        x = image.astype(f32)
        x_cl = jnp.transpose(x, (0, 2, 3, 1)).reshape(B, H, W * Cin)
        x_blk = jnp.pad(x_cl, ((0, 0), (0, S - H), (0, 0)))      # (B, S, W*Cin)
        xin = jnp.pad(x_blk.reshape(B * S, W * Cin), ((PREF, 0), (0, 0)))
        eT = embeddings.astype(f32).T                             # (kdim, B)
        embk = jnp.concatenate([jnp.tile(eT, (1, nh)),
                                jnp.ones((1, nh * B), f32)], axis=0)  # (kdim+1, nh*B)
        return pl.pallas_call(
            kernel,
            out_shape=jax.ShapeDtypeStruct((B, Cf), f32),
            in_specs=[pl.BlockSpec(memory_space=pltpu.MemorySpace.VMEM)] * 3,
            out_specs=pl.BlockSpec(memory_space=pltpu.MemorySpace.VMEM),
            scratch_shapes=[
                pltpu.VMEM((PREF + B * S, WCf), f32),   # padded conv2 input
            ],
        )(xin, embk, slab)

    return forward


# ---------------------------------------------------------------------------
# Pure-JAX reference (mirrors the PyTorch module) for a correctness self-check
# ---------------------------------------------------------------------------
def reference_forward(image, embeddings, raw, *, kernel_size, output_size, num_heads):
    pad = kernel_size // 2
    x = image.astype(jnp.float32)
    for wname, bname in (("conv1_w", "conv1_b"), ("conv2_w", "conv2_b")):
        x = jax.lax.conv_general_dilated(
            x, jnp.asarray(raw[wname], jnp.float32), (1, 1),
            ((pad, pad), (pad, pad)),
            dimension_numbers=("NCHW", "OIHW", "NCHW"))
        x = jax.nn.relu(x + jnp.asarray(raw[bname], jnp.float32)[None, :, None, None])
    pool = x.shape[2] // output_size
    x = jax.lax.reduce_window(x, -jnp.inf, jax.lax.max,
                              (1, 1, pool, pool), (1, 1, pool, pool), "VALID")
    x = jax.nn.relu(x)
    B = x.shape[0]
    y = x.reshape(B, -1)
    E = y.shape[1]
    Dh = E // num_heads
    in_b = jnp.asarray(raw["in_proj_b"], jnp.float32)
    q = (y @ jnp.asarray(raw["q_w"]).T + in_b[:E]) / jnp.sqrt(jnp.float32(Dh))
    k = embeddings.astype(jnp.float32) @ jnp.asarray(raw["k_w"]).T + in_b[E:2 * E]
    v = y @ jnp.asarray(raw["v_w"]).T + in_b[2 * E:]
    heads = []
    for h in range(num_heads):
        sl = slice(h * Dh, (h + 1) * Dh)
        p = jax.nn.softmax(q[:, sl] @ k[:, sl].T, axis=-1)
        heads.append(p @ v[:, sl])
    attn = jnp.concatenate(heads, axis=1) @ jnp.asarray(raw["out_w"]).T \
        + jnp.asarray(raw["out_b"])
    z = y + attn
    h1 = jax.nn.relu(z @ jnp.asarray(raw["lin1_w"]).T + jnp.asarray(raw["lin1_b"]))
    return jax.nn.sigmoid(h1 @ jnp.asarray(raw["lin2_w"]).T + jnp.asarray(raw["lin2_b"]))


# ---------------------------------------------------------------------------
if __name__ == "__main__":
    # Module hyper-parameters (small, consistent with the PyTorch __init__).
    image_size = 16
    conv_features = 4
    kernel_size = 2          # conv kernel = kernel_size+1 = 3, padding = 1 ("same")
    output_size = 4
    embed_dim = 32
    num_heads = 4
    batch = 2

    E = conv_features * output_size * output_size        # attention embed dim = 64

    key = jax.random.PRNGKey(0)
    ks = jax.random.split(key, 16)

    def rnd(k, shape, s=0.1):
        return jax.random.normal(k, shape, jnp.float32) * s

    # Deterministic synthetic parameters (PyTorch-convention shapes).
    raw = {
        "conv1_w": rnd(ks[0], (conv_features, 3, 3, 3)),
        "conv1_b": rnd(ks[1], (conv_features,)),
        "conv2_w": rnd(ks[2], (conv_features, conv_features, 3, 3)),
        "conv2_b": rnd(ks[3], (conv_features,)),
        "q_w": rnd(ks[4], (E, E)),
        "k_w": rnd(ks[5], (E, embed_dim)),
        "v_w": rnd(ks[6], (E, E)),
        "in_proj_b": rnd(ks[7], (3 * E,)),
        "out_w": rnd(ks[8], (E, E)),
        "out_b": rnd(ks[9], (E,)),
        "lin1_w": rnd(ks[10], (E, E)),
        "lin1_b": rnd(ks[11], (E,)),
        "lin2_w": rnd(ks[12], (conv_features, E)),
        "lin2_b": rnd(ks[13], (conv_features,)),
    }
    image = jax.random.normal(ks[14], (batch, 3, image_size, image_size), jnp.float32)
    embeddings = jax.random.normal(ks[15], (batch, embed_dim), jnp.float32)

    slab, offsets, cfg = pack_parameters(
        raw, image_size=image_size, conv_features=conv_features,
        kernel_size=kernel_size, output_size=output_size,
        embed_dim=embed_dim, num_heads=num_heads, batch=batch)

    forward = jax.jit(make_forward(offsets, cfg))
    out = jax.block_until_ready(forward(image, embeddings, slab))

    assert out.shape == (batch, conv_features), out.shape
    assert bool(jnp.all(jnp.isfinite(out)))
    assert bool(jnp.all((out >= 0.0) & (out <= 1.0)))     # sigmoid output range

    ref = reference_forward(image, embeddings, raw, kernel_size=kernel_size,
                            output_size=output_size, num_heads=num_heads)
    max_err = float(jnp.max(jnp.abs(out - ref)))
    assert max_err < 5e-3, f"mismatch vs reference: {max_err}"

    print("KERNEL_OK")
</pallas_src>

<mosaic_0001>
module attributes {stable_mosaic.version = 11 : i64} {
  func.func @kernel(%arg0: memref<56x48xf32, #tpu.memory_space<vmem>>, %arg1: memref<33x8xf32, #tpu.memory_space<vmem>>, %arg2: memref<960x128xf32, #tpu.memory_space<vmem>>, %arg3: memref<2x4xf32, #tpu.memory_space<vmem>>, %arg4: memref<56x64xf32, #tpu.memory_space<vmem>>) attributes {dimension_semantics = [], scalar_prefetch = 0 : i64, scratch_operands = 1 : i64, tpu.core_type = #tpu.core_type<tc>} {
    %cst = arith.constant 0.000000e+00 : f32
    %0 = vector.broadcast %cst : f32 to vector<8x64xf32>
    %c0 = arith.constant 0 : index
    %c0_0 = arith.constant 0 : index
    %1 = vector.load %arg4[%c0, %c0_0] : memref<56x64xf32, #tpu.memory_space<vmem>>, vector<8x64xf32>
    tpu.vector_store %arg4[%c0, %c0_0], %0 {strides = array<i32>} : memref<56x64xf32, #tpu.memory_space<vmem>>, vector<8x64xf32>,
    %cst_1 = arith.constant 0.000000e+00 : f32
    %2 = vector.broadcast %cst_1 : f32 to vector<8x64xf32>
    %c24 = arith.constant 24 : index
    %c0_2 = arith.constant 0 : index
    %3 = vector.load %arg4[%c24, %c0_2] : memref<56x64xf32, #tpu.memory_space<vmem>>, vector<8x64xf32>
    tpu.vector_store %arg4[%c24, %c0_2], %2 {strides = array<i32>} : memref<56x64xf32, #tpu.memory_space<vmem>>, vector<8x64xf32>,
    %cst_3 = arith.constant 0.000000e+00 : f32
    %4 = vector.broadcast %cst_3 : f32 to vector<8x64xf32>
    %c48 = arith.constant 48 : index
    %c0_4 = arith.constant 0 : index
    %5 = vector.load %arg4[%c48, %c0_4] : memref<56x64xf32, #tpu.memory_space<vmem>>, vector<8x64xf32>
    tpu.vector_store %arg4[%c48, %c0_4], %4 {strides = array<i32>} : memref<56x64xf32, #tpu.memory_space<vmem>>, vector<8x64xf32>,
    %c7 = arith.constant 7 : index
    %c0_5 = arith.constant 0 : index
    %6 = vector.load %arg0[%c7, %c0_5] : memref<56x48xf32, #tpu.memory_space<vmem>>, vector<40x48xf32>
    %c624 = arith.constant 624 : index
    %c0_6 = arith.constant 0 : index
    %7 = vector.load %arg2[%c624, %c0_6] : memref<960x128xf32, #tpu.memory_space<vmem>>, vector<48x64xf32>
    %cst_7 = arith.constant dense<0.000000e+00> : vector<40x64xf32>
    %8 = tpu.matmul %6, %7, %cst_7 {dimension_numbers = #tpu.dot_dimension_numbers<[1], [0], [0], [1], [0, 0, 1, 1], [], []>} : vector<40x48xf32>, vector<48x64xf32>, vector<40x64xf32> -> vector<40x64xf32>
    %c8 = arith.constant 8 : index
    %c0_8 = arith.constant 0 : index
    %9 = vector.load %arg0[%c8, %c0_8] : memref<56x48xf32, #tpu.memory_space<vmem>>, vector<40x48xf32>
    %c736 = arith.constant 736 : index
    %c0_9 = arith.constant 0 : index
    %10 = vector.load %arg2[%c736, %c0_9] : memref<960x128xf32, #tpu.memory_space<vmem>>, vector<48x64xf32>
    %cst_10 = arith.constant dense<0.000000e+00> : vector<40x64xf32>
    %11 = tpu.matmul %9, %10, %cst_10 {dimension_numbers = #tpu.dot_dimension_numbers<[1], [0], [0], [1], [0, 0, 1, 1], [], []>} : vector<40x48xf32>, vector<48x64xf32>, vector<40x64xf32> -> vector<40x64xf32>
    %12 = arith.addf %8, %11 : vector<40x64xf32>
    %c9 = arith.constant 9 : index
    %c0_11 = arith.constant 0 : index
    %13 = vector.load %arg0[%c9, %c0_11] : memref<56x48xf32, #tpu.memory_space<vmem>>, vector<40x48xf32>
    %c848 = arith.constant 848 : index
    %c0_12 = arith.constant 0 : index
    %14 = vector.load %arg2[%c848, %c0_12] : memref<960x128xf32, #tpu.memory_space<vmem>>, vector<48x64xf32>
    %cst_13 = arith.constant dense<0.000000e+00> : vector<40x64xf32>
    %15 = tpu.matmul %13, %14, %cst_13 {dimension_numbers = #tpu.dot_dimension_numbers<[1], [0], [0], [1], [0, 0, 1, 1], [], []>} : vector<40x48xf32>, vector<48x64xf32>, vector<40x64xf32> -> vector<40x64xf32>
    %16 = arith.addf %12, %15 : vector<40x64xf32>
    %c0_14 = arith.constant 0 : index
    %c0_15 = arith.constant 0 : index
    %17 = vector.load %arg2[%c0_14, %c0_15] : memref<960x128xf32, #tpu.memory_space<vmem>>, vector<1x64xf32>
    %18 = vector.broadcast %17 : vector<1x64xf32> to vector<40x64xf32>
    %19 = arith.addf %16, %18 : vector<40x64xf32>
    %cst_16 = arith.constant 0.000000e+00 : f32
    %20 = vector.broadcast %cst_16 : f32 to vector<40x64xf32>
    %21 = arith.maximumf %19, %20 : vector<40x64xf32>
    %22 = vector.extract_strided_slice %21 {offsets = [0, 0], sizes = [16, 64], strides = [1, 1]} : vector<40x64xf32> to vector<16x64xf32>
    %c8_17 = arith.constant 8 : index
    %c0_18 = arith.constant 0 : index
    %23 = vector.load %arg4[%c8_17, %c0_18] : memref<56x64xf32, #tpu.memory_space<vmem>>, vector<16x64xf32>
    tpu.vector_store %arg4[%c8_17, %c0_18], %22 {strides = array<i32>} : memref<56x64xf32, #tpu.memory_space<vmem>>, vector<16x64xf32>,
    %24 = vector.extract_strided_slice %21 {offsets = [24, 0], sizes = [16, 64], strides = [1, 1]} : vector<40x64xf32> to vector<16x64xf32>
    %c32 = arith.constant 32 : index
    %c0_19 = arith.constant 0 : index
    %25 = vector.load %arg4[%c32, %c0_19] : memref<56x64xf32, #tpu.memory_space<vmem>>, vector<16x64xf32>
    tpu.vector_store %arg4[%c32, %c0_19], %24 {strides = array<i32>} : memref<56x64xf32, #tpu.memory_space<vmem>>, vector<16x64xf32>,
    %c7_20 = arith.constant 7 : index
    %c0_21 = arith.constant 0 : index
    %26 = vector.load %arg4[%c7_20, %c0_21] : memref<56x64xf32, #tpu.memory_space<vmem>>, vector<40x64xf32>
    %c672 = arith.constant 672 : index
    %c0_22 = arith.constant 0 : index
    %27 = vector.load %arg2[%c672, %c0_22] : memref<960x128xf32, #tpu.memory_space<vmem>>, vector<64x64xf32>
    %cst_23 = arith.constant dense<0.000000e+00> : vector<40x64xf32>
    %28 = tpu.matmul %26, %27, %cst_23 {dimension_numbers = #tpu.dot_dimension_numbers<[1], [0], [0], [1], [0, 0, 1, 1], [], []>} : vector<40x64xf32>, vector<64x64xf32>, vector<40x64xf32> -> vector<40x64xf32>
    %c8_24 = arith.constant 8 : index
    %c0_25 = arith.constant 0 : index
    %29 = vector.load %arg4[%c8_24, %c0_25] : memref<56x64xf32, #tpu.memory_space<vmem>>, vector<40x64xf32>
    %c784 = arith.constant 784 : index
    %c0_26 = arith.constant 0 : index
    %30 = vector.load %arg2[%c784, %c0_26] : memref<960x128xf32, #tpu.memory_space<vmem>>, vector<64x64xf32>
    %cst_27 = arith.constant dense<0.000000e+00> : vector<40x64xf32>
    %31 = tpu.matmul %29, %30, %cst_27 {dimension_numbers = #tpu.dot_dimension_numbers<[1], [0], [0], [1], [0, 0, 1, 1], [], []>} : vector<40x64xf32>, vector<64x64xf32>, vector<40x64xf32> -> vector<40x64xf32>
    %32 = arith.addf %28, %31 : vector<40x64xf32>
    %c9_28 = arith.constant 9 : index
    %c0_29 = arith.constant 0 : index
    %33 = vector.load %arg4[%c9_28, %c0_29] : memref<56x64xf32, #tpu.memory_space<vmem>>, vector<40x64xf32>
    %c896 = arith.constant 896 : index
    %c0_30 = arith.constant 0 : index
    %34 = vector.load %arg2[%c896, %c0_30] : memref<960x128xf32, #tpu.memory_space<vmem>>, vector<64x64xf32>
    %cst_31 = arith.constant dense<0.000000e+00> : vector<40x64xf32>
    %35 = tpu.matmul %33, %34, %cst_31 {dimension_numbers = #tpu.dot_dimension_numbers<[1], [0], [0], [1], [0, 0, 1, 1], [], []>} : vector<40x64xf32>, vector<64x64xf32>, vector<40x64xf32> -> vector<40x64xf32>
    %36 = arith.addf %32, %35 : vector<40x64xf32>
    %c8_32 = arith.constant 8 : index
    %c0_33 = arith.constant 0 : index
    %37 = vector.load %arg2[%c8_32, %c0_33] : memref<960x128xf32, #tpu.memory_space<vmem>>, vector<1x64xf32>
    %38 = vector.broadcast %37 : vector<1x64xf32> to vector<40x64xf32>
    %39 = arith.addf %36, %38 : vector<40x64xf32>
    %cst_34 = arith.constant 0.000000e+00 : f32
    %40 = vector.broadcast %cst_34 : f32 to vector<40x64xf32>
    %41 = arith.maximumf %39, %40 : vector<40x64xf32>
    %42 = vector.extract_strided_slice %41 {offsets = [0, 0], sizes = [37, 64], strides = [1, 1]} : vector<40x64xf32> to vector<37x64xf32>
    %43 = vector.extract_strided_slice %41 {offsets = [1, 0], sizes = [37, 64], strides = [1, 1]} : vector<40x64xf32> to vector<37x64xf32>
    %44 = arith.maximumf %42, %43 : vector<37x64xf32>
    %45 = vector.extract_strided_slice %41 {offsets = [2, 0], sizes = [37, 64], strides = [1, 1]} : vector<40x64xf32> to vector<37x64xf32>
    %46 = arith.maximumf %44, %45 : vector<37x64xf32>
    %47 = vector.extract_strided_slice %41 {offsets = [3, 0], sizes = [37, 64], strides = [1, 1]} : vector<40x64xf32> to vector<37x64xf32>
    %48 = arith.maximumf %46, %47 : vector<37x64xf32>
    %49 = vector.extract_strided_slice %48 {offsets = [0, 0], sizes = [37, 52], strides = [1, 1]} : vector<37x64xf32> to vector<37x52xf32>
    %50 = vector.extract_strided_slice %48 {offsets = [0, 4], sizes = [37, 52], strides = [1, 1]} : vector<37x64xf32> to vector<37x52xf32>
    %51 = arith.maximumf %49, %50 : vector<37x52xf32>
    %52 = vector.extract_strided_slice %48 {offsets = [0, 8], sizes = [37, 52], strides = [1, 1]} : vector<37x64xf32> to vector<37x52xf32>
    %53 = arith.maximumf %51, %52 : vector<37x52xf32>
    %54 = vector.extract_strided_slice %48 {offsets = [0, 12], sizes = [37, 52], strides = [1, 1]} : vector<37x64xf32> to vector<37x52xf32>
    %55 = arith.maximumf %53, %54 : vector<37x52xf32>
    %c16 = arith.constant 16 : index
    %c0_35 = arith.constant 0 : index
    %56 = vector.load %arg2[%c16, %c0_35] : memref<960x128xf32, #tpu.memory_space<vmem>>, vector<52x64xf32>
    %cst_36 = arith.constant dense<0.000000e+00> : vector<37x64xf32>
    %57 = tpu.matmul %55, %56, %cst_36 {dimension_numbers = #tpu.dot_dimension_numbers<[1], [0], [0], [1], [0, 0, 1, 1], [], []>} : vector<37x52xf32>, vector<52x64xf32>, vector<37x64xf32> -> vector<37x64xf32>
    %c72 = arith.constant 72 : index
    %c0_37 = arith.constant 0 : index
    %58 = vector.load %arg2[%c72, %c0_37] : memref<960x128xf32, #tpu.memory_space<vmem>>, vector<37x64xf32>
    %59 = arith.mulf %57, %58 : vector<37x64xf32>
    %c112 = arith.constant 112 : index
    %c0_38 = arith.constant 0 : index
    %60 = vector.load %arg2[%c112, %c0_38] : memref<960x128xf32, #tpu.memory_space<vmem>>, vector<2x37xf32>
    %cst_39 = arith.constant dense<0.000000e+00> : vector<2x64xf32>
    %61 = tpu.matmul %60, %59, %cst_39 {dimension_numbers = #tpu.dot_dimension_numbers<[1], [0], [0], [1], [0, 0, 1, 1], [], []>} : vector<2x37xf32>, vector<37x64xf32>, vector<2x64xf32> -> vector<2x64xf32>
    %c120 = arith.constant 120 : index
    %c0_40 = arith.constant 0 : index
    %62 = vector.load %arg2[%c120, %c0_40] : memref<960x128xf32, #tpu.memory_space<vmem>>, vector<64x128xf32>
    %cst_41 = arith.constant dense<0.000000e+00> : vector<2x128xf32>
    %63 = tpu.matmul %61, %62, %cst_41 {dimension_numbers = #tpu.dot_dimension_numbers<[1], [0], [0], [1], [0, 0, 1, 1], [], []>} : vector<2x64xf32>, vector<64x128xf32>, vector<2x128xf32> -> vector<2x128xf32>
    %c184 = arith.constant 184 : index
    %c0_42 = arith.constant 0 : index
    %64 = vector.load %arg2[%c184, %c0_42] : memref<960x128xf32, #tpu.memory_space<vmem>>, vector<1x128xf32>
    %65 = vector.broadcast %64 : vector<1x128xf32> to vector<2x128xf32>
    %66 = arith.addf %63, %65 : vector<2x128xf32>
    %67 = vector.extract_strided_slice %66 {offsets = [0, 0], sizes = [2, 64], strides = [1, 1]} : vector<2x128xf32> to vector<2x64xf32>
    %c192 = arith.constant 192 : index
    %c0_43 = arith.constant 0 : index
    %68 = vector.load %arg2[%c192, %c0_43] : memref<960x128xf32, #tpu.memory_space<vmem>>, vector<64x33xf32>
    %c0_44 = arith.constant 0 : index
    %c0_45 = arith.constant 0 : index
    %69 = vector.load %arg1[%c0_44, %c0_45] : memref<33x8xf32, #tpu.memory_space<vmem>>, vector<33x8xf32>
    %cst_46 = arith.constant dense<0.000000e+00> : vector<64x8xf32>
    %70 = tpu.matmul %68, %69, %cst_46 {dimension_numbers = #tpu.dot_dimension_numbers<[1], [0], [0], [1], [0, 0, 1, 1], [], []>} : vector<64x33xf32>, vector<33x8xf32>, vector<64x8xf32> -> vector<64x8xf32>
    %c256 = arith.constant 256 : index
    %c0_47 = arith.constant 0 : index
    %71 = vector.load %arg2[%c256, %c0_47] : memref<960x128xf32, #tpu.memory_space<vmem>>, vector<64x8xf32>
    %72 = arith.mulf %70, %71 : vector<64x8xf32>
    %cst_48 = arith.constant dense<0.000000e+00> : vector<2x8xf32>
    %73 = tpu.matmul %67, %72, %cst_48 {dimension_numbers = #tpu.dot_dimension_numbers<[1], [0], [0], [1], [0, 0, 1, 1], [], []>} : vector<2x64xf32>, vector<64x8xf32>, vector<2x8xf32> -> vector<2x8xf32>
    %cst_49 = arith.constant dense<0xFF800000> : vector<2xf32>
    %74 = vector.multi_reduction <maximumf>, %73, %cst_49 [1] : vector<2x8xf32> to vector<2xf32>
    %75 = vector.shape_cast %74 : vector<2xf32> to vector<2x1xf32>
    %76 = vector.broadcast %75 : vector<2x1xf32> to vector<2x8xf32>
    %77 = arith.subf %73, %76 : vector<2x8xf32>
    %78 = math.exp %77 : vector<2x8xf32>
    %c336 = arith.constant 336 : index
    %c0_50 = arith.constant 0 : index
    %79 = vector.load %arg2[%c336, %c0_50] : memref<960x128xf32, #tpu.memory_space<vmem>>, vector<8x8xf32>
    %cst_51 = arith.constant dense<0.000000e+00> : vector<2x8xf32>
    %80 = tpu.matmul %78, %79, %cst_51 {dimension_numbers = #tpu.dot_dimension_numbers<[1], [0], [0], [1], [0, 0, 1, 1], [], []>} : vector<2x8xf32>, vector<8x8xf32>, vector<2x8xf32> -> vector<2x8xf32>
    %81 = tpu.reciprocal %80 {approx = true} : vector<2x8xf32> -> vector<2x8xf32>
    %82 = arith.mulf %78, %81 : vector<2x8xf32>
    %c320 = arith.constant 320 : index
    %c0_52 = arith.constant 0 : index
    %83 = vector.load %arg2[%c320, %c0_52] : memref<960x128xf32, #tpu.memory_space<vmem>>, vector<8x2xf32>
    %cst_53 = arith.constant dense<0.000000e+00> : vector<8x128xf32>
    %84 = tpu.matmul %83, %66, %cst_53 {dimension_numbers = #tpu.dot_dimension_numbers<[1], [0], [0], [1], [0, 0, 1, 1], [], []>} : vector<8x2xf32>, vector<2x128xf32>, vector<8x128xf32> -> vector<8x128xf32>
    %c328 = arith.constant 328 : index
    %c0_54 = arith.constant 0 : index
    %85 = vector.load %arg2[%c328, %c0_54] : memref<960x128xf32, #tpu.memory_space<vmem>>, vector<8x128xf32>
    %86 = arith.mulf %84, %85 : vector<8x128xf32>
    %cst_55 = arith.constant dense<0.000000e+00> : vector<2x128xf32>
    %87 = tpu.matmul %82, %86, %cst_55 {dimension_numbers = #tpu.dot_dimension_numbers<[1], [0], [0], [1], [0, 0, 1, 1], [], []>} : vector<2x8xf32>, vector<8x128xf32>, vector<2x128xf32> -> vector<2x128xf32>
    %c344 = arith.constant 344 : index
    %c0_56 = arith.constant 0 : index
    %88 = vector.load %arg2[%c344, %c0_56] : memref<960x128xf32, #tpu.memory_space<vmem>>, vector<128x64xf32>
    %cst_57 = arith.constant dense<0.000000e+00> : vector<2x64xf32>
    %89 = tpu.matmul %87, %88, %cst_57 {dimension_numbers = #tpu.dot_dimension_numbers<[1], [0], [0], [1], [0, 0, 1, 1], [], []>} : vector<2x128xf32>, vector<128x64xf32>, vector<2x64xf32> -> vector<2x64xf32>
    %c472 = arith.constant 472 : index
    %c0_58 = arith.constant 0 : index
    %90 = vector.load %arg2[%c472, %c0_58] : memref<960x128xf32, #tpu.memory_space<vmem>>, vector<1x64xf32>
    %91 = vector.broadcast %90 : vector<1x64xf32> to vector<2x64xf32>
    %92 = arith.addf %89, %91 : vector<2x64xf32>
    %93 = arith.addf %61, %92 : vector<2x64xf32>
    %c480 = arith.constant 480 : index
    %c0_59 = arith.constant 0 : index
    %94 = vector.load %arg2[%c480, %c0_59] : memref<960x128xf32, #tpu.memory_space<vmem>>, vector<64x64xf32>
    %cst_60 = arith.constant dense<0.000000e+00> : vector<2x64xf32>
    %95 = tpu.matmul %93, %94, %cst_60 {dimension_numbers = #tpu.dot_dimension_numbers<[1], [0], [0], [1], [0, 0, 1, 1], [], []>} : vector<2x64xf32>, vector<64x64xf32>, vector<2x64xf32> -> vector<2x64xf32>
    %c544 = arith.constant 544 : index
    %c0_61 = arith.constant 0 : index
    %96 = vector.load %arg2[%c544, %c0_61] : memref<960x128xf32, #tpu.memory_space<vmem>>, vector<1x64xf32>
    %97 = vector.broadcast %96 : vector<1x64xf32> to vector<2x64xf32>
    %98 = arith.addf %95, %97 : vector<2x64xf32>
    %cst_62 = arith.constant 0.000000e+00 : f32
    %99 = vector.broadcast %cst_62 : f32 to vector<2x64xf32>
    %100 = arith.maximumf %98, %99 : vector<2x64xf32>
    %c552 = arith.constant 552 : index
    %c0_63 = arith.constant 0 : index
    %101 = vector.load %arg2[%c552, %c0_63] : memref<960x128xf32, #tpu.memory_space<vmem>>, vector<64x4xf32>
    %cst_64 = arith.constant dense<0.000000e+00> : vector<2x4xf32>
    %102 = tpu.matmul %100, %101, %cst_64 {dimension_numbers = #tpu.dot_dimension_numbers<[1], [0], [0], [1], [0, 0, 1, 1], [], []>} : vector<2x64xf32>, vector<64x4xf32>, vector<2x4xf32> -> vector<2x4xf32>
    %c616 = arith.constant 616 : index
    %c0_65 = arith.constant 0 : index
    %103 = vector.load %arg2[%c616, %c0_65] : memref<960x128xf32, #tpu.memory_space<vmem>>, vector<1x4xf32>
    %104 = vector.broadcast %103 : vector<1x4xf32> to vector<2x4xf32>
    %105 = arith.addf %102, %104 : vector<2x4xf32>
    %106 = arith.negf %105 : vector<2x4xf32>
    %107 = math.exp %106 : vector<2x4xf32>
    %cst_66 = arith.constant 1.000000e+00 : f32
    %108 = vector.broadcast %cst_66 : f32 to vector<2x4xf32>
    %109 = arith.addf %108, %107 : vector<2x4xf32>
    %110 = arith.divf %108, %109 : vector<2x4xf32>
    %c0_67 = arith.constant 0 : index
    %c0_68 = arith.constant 0 : index
    %111 = vector.load %arg3[%c0_67, %c0_68] : memref<2x4xf32, #tpu.memory_space<vmem>>, vector<2x4xf32>
    tpu.vector_store %arg3[%c0_67, %c0_68], %110 {strides = array<i32>} : memref<2x4xf32, #tpu.memory_space<vmem>>, vector<2x4xf32>,
    return
  }
}

</mosaic_0001>

<bundles_post_ra>
// kernel: forward.1
= control target key start
LH: loop header
LB: loop body
LE: loop exit
PB: predicated region body
PF: predicated region fallthrough
CT: control target
= control target key end

     0   :  { %8 = vsyncpa [#allocation4], 0  ;;  %s3111_s0 = inlined_call_operand.vmem [shape: f32[56,48], index: 0, kind: input, shape index: {}]   ;;  %s3112_s1 = inlined_call_operand.vmem [shape: f32[33,8], index: 1, kind: input, shape index: {}]   ;;  %s3113_s2 = inlined_call_operand.hbm [shape: f32[960,128], index: 2, kind: input, shape index: {}]   ;;  %s3114_s3 = inlined_call_operand.hbm [shape: f32[2,4], index: 3, kind: output, shape index: {}]  }
   0x1   :  { %9 = vsyncpa [#allocation5], 0  ;;  %s2768_s12 = smov [#allocation3]   ;;  %s2720_s16 = scalar_lea.hbm %s3113_s2, 15360 }
   0x2   :  { %s19_s13 = sshll.u32 %s2768_s12, 4  ;;  %p2721_p0 = scmp.ne.s32.totalorder %s3113_s2, %s2720_s16  ;;  %s20_s13 = int_to_ptr.vmem [resolvable:$true] %s19_s13 }
   0x3   :  { %p2724_p1 = scmp.lt.u32.totalorder %s2720_s16, %s3113_s2 }
   0x5   :  { %p2726_p2 = pnand %p2724_p1, %p2721_p0 }
   0x7   :  { %2729 = shalt.err (!%p2726_p2)
}
   0x8   :  { %s2730_s21 = scalar_lea.vmem %s20_s13, 15360  ;;  %p2735_p4 = scmp.lt.s32.totalorder %s20_s13, %s20_s13 }
   0x9   :  { %p2731_p3 = scmp.ne.s32.totalorder %s20_s13, %s2730_s21  ;;  %p2736_p5 = scmp.lt.s32.totalorder %s2730_s21, %s2730_s21 }
   0xb   :  { %p2737_p6 = por %p2736_p5, %p2735_p4 }
   0xd   :  { %p2738_p7 = pnand %p2737_p6, %p2731_p3 }
   0xf   :  { %2741 = shalt.err (!%p2738_p7)
}
  0x10   :  { %s2769_s22 = smov 128   ;;  %s2770_s23 = smov 8  }
  0x11   :  { %25 = dma.hbm_to_vmem [thread:$0]  %s3113_s2, 15360, %s20_s13, [#allocation4], %s2769_s22, %s2769_s22, %s2770_s23  }
  0x12   :  { %2764 = dma.done.wait [#allocation4], 15360  }
  0x13   :  { %2765 = vsyncadd [#allocation4], 4294951936  ;;  %v2771_v0 = vmov 0.0|0.0   ;;  %vm2772_vm0 = vmmov 0   ;;  %v2773_v1 = vmov 0.0   ;;  %v49_v2 = vld [vmem:[#allocation3 + $0x2e0] sm:$0xff] }
  0x14   :  { %2544 = vmatprep.subr.bf16.mxu0 %v2771_v0  ;;  %2553 = vmatprep.subr.bf16.mxu1 %v2771_v0  ;;  %v50_v3 = vld [vmem:[#allocation3 + $0x2e8] sm:$0xff]  ;;  %v38_v4 = vld [vmem:[#allocation3 + $0x270] sm:$0xff]  ;;  %v39_v6 = vld [vmem:[#allocation3 + $0x278] sm:$0xff]  ;;  %vm55_vm1 = vcmask 392192   ;;  %vm29_vm2 = vcmask 523264   ;;  %vm779_vm3 = vcmask 1046528  }
  0x15   :  { %2192 = vmatprep.mubr.msk.f32.mxu0 %vm2772_vm0, %v2773_v1  ;;  %2219 = vmatprep.mubr.msk.f32.mxu1 %vm2772_vm0, %v2773_v1  ;;  %v2545_v5 = vpack.c.bf16 %v50_v3, %v49_v2  ;;  %v51_v7 = vld [vmem:[#allocation3 + $0x2f0] sm:$0xff]  ;;  %v52_v8 = vld [vmem:[#allocation3 + $0x2f8] sm:$0xff]  ;;  %v2554_v9 = vpack.c.bf16 %v39_v6, %v38_v4  ;;  %v40_v10 = vld [vmem:[#allocation3 + $0x280] sm:$0xff]  ;;  %30 = vst.msk [vmem:[#allocation2] sm:$0xff] %vm29_vm2, %v2773_v1  ;;  %vm799_vm4 = vcmask 1045504   ;;  %vm819_vm5 = vcmask 1044480  }
  0x16   :  { %v41_v11 = vld [vmem:[#allocation3 + $0x288] sm:$0xff]  ;;  %v2548_v12 = vpack.c.bf16 %v52_v8, %v51_v7  ;;  %v53_v14 = vld [vmem:[#allocation3 + $0x300] sm:$0xff]  ;;  %v42_v16 = vld [vmem:[#allocation3 + $0x290] sm:$0xff]  ;;  %31 = vst.msk [vmem:[#allocation2 + $0x18] sm:$0xff] %vm29_vm2, %v2773_v1  ;;  %vm927_vm6 = vcmask 1043456   ;;  %s2775_s27 = smov 124  }
  0x17   :  { %2546 = vmatpush3.bf16.msra.mxu0 %v2545_v5  ;;  %2555 = vmatpush3.bf16.msra.mxu1 %v2554_v9  ;;  %v2557_v13 = vpack.c.bf16 %v41_v11, %v40_v10  ;;  %v54_v15 = vld [vmem:[#allocation3 + $0x308] sm:$0xff]  ;;  %v43_v17 = vld [vmem:[#allocation3 + $0x298] sm:$0xff]  ;;  %v269_v20 = vld [vmem:[#allocation3 + $0x350] sm:$0xff]  ;;  %32 = vst.msk [vmem:[#allocation2 + $0x30] sm:$0xff] %vm29_vm2, %v2773_v1  ;;  %s2776_s28 = smov 120   ;;  %vm911_vm7 = vcmask 424960  }
  0x18   :  { %2547 = vmatprep.subr.bf16.mxu0 %v2771_v0  ;;  %2556 = vmatprep.subr.bf16.mxu1 %v2771_v0  ;;  %v2551_v18 = vpack.c.bf16 %v54_v15, %v53_v14  ;;  %v2560_v19 = vpack.c.bf16 %v43_v17, %v42_v16  ;;  %v270_v21 = vld [vmem:[#allocation3 + $0x358] sm:$0xff]  ;;  %v44_v22 = vld [vmem:[%s3111_s0 + $0x8] sm:$0xff]  ;;  %v271_v25 = vld [vmem:[#allocation3 + $0x360] sm:$0xff]  ;;  %vm1208_vm8 = vcmask 269312   ;;  %vm1233_vm9 = vcmask 1040384  }
  0x19   :  { %v33_v23 = vld [vmem:[%s3111_s0 + $0x7] sm:$0xff]  ;;  %v2563_v24 = vpack.c.bf16 %v270_v21, %v269_v20  ;;  %v45_v27 = vld [vmem:[%s3111_s0 + $0x10] sm:$0xff]  ;;  %v46_v32 = vld [vmem:[%s3111_s0 + $0x18] sm:$0xff]  ;;  %vm1032_vm10 = vcmask 302080   ;;  %vm1520_vm11 = vcmask 1041408   ;;  %vm1431_vm12 = vcmask 58368  }
  0x1a   :  { %v272_v26 = vld [vmem:[#allocation3 + $0x368] sm:$0xff]  ;;  %v34_v28 = vld [vmem:[%s3111_s0 + $0xf] sm:$0xff]  ;;  %v35_v33 = vld [vmem:[%s3111_s0 + $0x17] sm:$0xff]  ;;  %vm1516_vm13 = vcmask 15360   ;;  %vm1439_vm14 = vcmask 64512   ;;  %vm1939_vm15 = vcmask 25600  }
  0x1b   :  { %2549 = vmatpush3.bf16.msra.mxu0 %v2548_v12  ;;  %2558 = vmatpush3.bf16.msra.mxu1 %v2557_v13  ;;  %v2566_v29 = vpack.c.bf16 %v272_v26, %v271_v25  ;;  %v273_v30 = vld [vmem:[#allocation3 + $0x370] sm:$0xff]  ;;  %v274_v31 = vld [vmem:[#allocation3 + $0x378] sm:$0xff]  ;;  %v47_v35 = vld [vmem:[%s3111_s0 + $0x20] sm:$0xff] }
  0x1c   :  { %2550 = vmatprep.subr.bf16.mxu0 %v2771_v0  ;;  %2559 = vmatprep.subr.bf16.mxu1 %v2771_v0  ;;  %v2569_v34 = vpack.c.bf16 %v274_v31, %v273_v30  ;;  %v36_v36 = vld [vmem:[%s3111_s0 + $0x1f] sm:$0xff]  ;;  %v48_v37 = vld [vmem:[%s3111_s0 + $0x28] sm:$0xff]  ;;  %v265_v40 = vld [vmem:[%s3111_s0 + $0x11] sm:$0xff] }
  0x1d   :  { %v37_v38 = vld [vmem:[%s3111_s0 + $0x27] sm:$0xff]  ;;  %v266_v41 = vld [vmem:[%s3111_s0 + $0x19] sm:$0xff]  ;;  %v419_v45 = vld [vmem:[#allocation3 + $0x318] sm:$0xff] }
  0x1e   :  { %v264_v39 = vld [vmem:[%s3111_s0 + $0x9] sm:$0xff]  ;;  %v267_v42 = vld [vmem:[%s3111_s0 + $0x21] sm:$0xff]  ;;  %v405_v46 = vld [vmem:[#allocation3 + $0x2a0] sm:$0xff] }
  0x1f   :  { %2552 = vmatpush3.bf16.msra.mxu0 %v2551_v18  ;;  %2561 = vmatpush3.bf16.msra.mxu1 %v2560_v19  ;;  %v268_v43 = vld [vmem:[%s3111_s0 + $0x29] sm:$0xff]  ;;  %v406_v48 = vld [vmem:[#allocation3 + $0x2a8] sm:$0xff]  ;;  %v420_v50 = vld [vmem:[#allocation3 + $0x320] sm:$0xff]  ;;  %s2774_s0 = smov 116  }
  0x20   :  { %2562 = vmatprep.subr.bf16.mxu0 %v2771_v0  ;;  %2571 = vmatprep.subr.bf16.mxu1 %v2771_v0  ;;  %v418_v44 = vld [vmem:[#allocation3 + $0x310] sm:$0xff]  ;;  %v2584_v49 = vpack.c.bf16 %v406_v48, %v405_v46  ;;  %v421_v51 = vld [vmem:[#allocation3 + $0x328] sm:$0xff]  ;;  %v408_v54 = vld [vmem:[#allocation3 + $0x2b8] sm:$0xff] }
  0x21   :  { %v2572_v47 = vpack.c.bf16 %v419_v45, %v418_v44  ;;  %v407_v52 = vld [vmem:[#allocation3 + $0x2b0] sm:$0xff]  ;;  %v2575_v53 = vpack.c.bf16 %v421_v51, %v420_v50  ;;  %v423_v57 = vld [vmem:[#allocation3 + $0x338] sm:$0xff]  ;;  %v409_v58 = vld [vmem:[#allocation3 + $0x2c0] sm:$0xff] }
  0x22   :  { %2193 = vmatmul.mubr.msk.f32.vlgmr.msra.gmra.mrb[0].mxu0 %vm55_vm1, %v44_v22  ;;  %2220 = vmatmul.mubr.msk.f32.vlgmr.msra.gmra.mrb[0].mxu1 %vm55_vm1, %v33_v23  ;;  %v2587_v55 = vpack.c.bf16 %v408_v54, %v407_v52  ;;  %v422_v56 = vld [vmem:[#allocation3 + $0x330] sm:$0xff]  ;;  %v410_v60 = vld [vmem:[#allocation3 + $0x2c8] sm:$0xff]  ;;  %v424_v62 = vld [vmem:[#allocation3 + $0x340] sm:$0xff] }
  0x23   :  { %2195 = vmatprep.mubr.msk.f32.mxu0 %vm2772_vm0, %v2773_v1  ;;  %2222 = vmatprep.mubr.msk.f32.mxu1 %vm2772_vm0, %v2773_v1  ;;  %v2578_v59 = vpack.c.bf16 %v423_v57, %v422_v56  ;;  %v2590_v61 = vpack.c.bf16 %v410_v60, %v409_v58  ;;  %v425_v63 = vld [vmem:[#allocation3 + $0x348] sm:$0xff]  ;;  %v411_v2 = vld [vmem:[#allocation3 + $0x2d0] sm:$0xff]  ;;  %v412_v4 = vld [vmem:[#allocation3 + $0x2d8] sm:$0xff] }
  0x24   :  { %2564 = vmatpush3.bf16.msra.mxu0 %v2563_v24  ;;  %2573 = vmatpush3.bf16.msra.mxu1 %v2572_v47  ;;  %v2581_v3 = vpack.c.bf16 %v425_v63, %v424_v62  ;;  %v2593_v5 = vpack.c.bf16 %v412_v4, %v411_v2  ;;  %v1971_v31 = vld [vmem:[#allocation3] ss:$0 sm:$0xff]  ;;  %v642_v44 = vld [vmem:[#allocation3 + $0x388] sm:$0xff]  ;;  %v644_v52 = vld [vmem:[#allocation3 + $0x398] sm:$0xff] }
  0x25   :  { %2565 = vmatprep.subr.bf16.mxu0 %v2771_v0  ;;  %2574 = vmatprep.subr.bf16.mxu1 %v2771_v0  ;;  %v646_v62 = vld [vmem:[#allocation3 + $0x3a8] sm:$0xff]  ;;  %v415_v2 = vld [vmem:[#allocation2 + $0x18] sm:$0xff] }
  0x26   :  { %2196 = vmatmul.mubr.msk.f32.gmra.mrb[2].mxu0 %vm55_vm1, %v45_v27  ;;  %2223 = vmatmul.mubr.msk.f32.gmra.mrb[2].mxu1 %vm55_vm1, %v34_v28 }
  0x27   :  { %2198 = vmatprep.mubr.msk.f32.mxu0 %vm2772_vm0, %v2773_v1  ;;  %2225 = vmatprep.mubr.msk.f32.mxu1 %vm2772_vm0, %v2773_v1 }
  0x28   :  { %2567 = vmatpush3.bf16.msra.mxu0 %v2566_v29  ;;  %2576 = vmatpush3.bf16.msra.mxu1 %v2575_v53 }
  0x29   :  { %2568 = vmatprep.subr.bf16.mxu0 %v2771_v0  ;;  %2577 = vmatprep.subr.bf16.mxu1 %v2771_v0 }
  0x2a   :  { %2199 = vmatmul.mubr.msk.f32.gmra.mrb[4].mxu0 %vm55_vm1, %v46_v32  ;;  %2226 = vmatmul.mubr.msk.f32.gmra.mrb[4].mxu1 %vm55_vm1, %v35_v33 }
  0x2b   :  { %2201 = vmatprep.mubr.msk.f32.mxu0 %vm2772_vm0, %v2773_v1  ;;  %2228 = vmatprep.mubr.msk.f32.mxu1 %vm2772_vm0, %v2773_v1 }
  0x2c   :  { %2570 = vmatpush3.bf16.msra.mxu0 %v2569_v34  ;;  %2579 = vmatpush3.bf16.msra.mxu1 %v2578_v59  ;;  %v645_v59 = vld [vmem:[#allocation3 + $0x3a0] sm:$0xff] }
  0x2d   :  { %2583 = vmatprep.subr.bf16.mxu0 %v2771_v0  ;;  %2580 = vmatprep.subr.bf16.mxu1 %v2771_v0  ;;  %v2602_v4 = vpack.c.bf16 %v646_v62, %v645_v59  ;;  %v908_v59 = vld [vmem:[#allocation3 + $0x30] sm:$0xff] }
  0x2e   :  { %2202 = vmatmul.mubr.msk.f32.gmra.mrb[6].mxu0 %vm55_vm1, %v47_v35  ;;  %2229 = vmatmul.mubr.msk.f32.gmra.mrb[6].mxu1 %vm55_vm1, %v36_v36 }
  0x2f   :  { %2204 = vmatprep.mubr.msk.f32.mxu0 %vm2772_vm0, %v2773_v1  ;;  %2231 = vmatprep.mubr.msk.f32.mxu1 %vm2772_vm0, %v2773_v1 }
  0x30   :  { %2582 = vmatpush3.bf16.msra.mxu1 %v2581_v3 }
  0x31   :  { %2595 = vmatprep.subr.bf16.mxu1 %v2771_v0 }
  0x32   :  { %2205 = vmatmul.mubr.msk.f32.gmra.mrb[8].mxu0 %vm55_vm1, %v48_v37  ;;  %2232 = vmatmul.mubr.msk.f32.gmra.mrb[8].mxu1 %vm55_vm1, %v37_v38 }
  0x33   :  { %2246 = vmatprep.mubr.msk.f32.mxu0 %vm2772_vm0, %v2773_v1  ;;  %2277 = vmatprep.mubr.msk.f32.mxu1 %vm2772_vm0, %v2773_v1 }
  0x36   :  { %2247 = vmatmul.mubr.msk.f32.vlgmr.msra.gmra.mrb[10].mxu0 %vm55_vm1, %v264_v39 }
  0x37   :  { %2249 = vmatprep.mubr.msk.f32.mxu0 %vm2772_vm0, %v2773_v1  ;;  %2585 = vmatpush3.bf16.msra.mxu0 %v2584_v49  ;;  %v643_v49 = vld [vmem:[#allocation3 + $0x390] sm:$0xff] }
  0x38   :  { %2586 = vmatprep.subr.bf16.mxu0 %v2771_v0  ;;  %v2599_v58 = vpack.c.bf16 %v644_v52, %v643_v49 }
  0x3a   :  { %2250 = vmatmul.mubr.msk.f32.gmra.mrb[12].mxu0 %vm55_vm1, %v265_v40 }
  0x3b   :  { %2252 = vmatprep.mubr.msk.f32.mxu0 %vm2772_vm0, %v2773_v1  ;;  %2588 = vmatpush3.bf16.msra.mxu0 %v2587_v55 }
  0x3c   :  { %2589 = vmatprep.subr.bf16.mxu0 %v2771_v0 }
  0x3e   :  { %2253 = vmatmul.mubr.msk.f32.gmra.mrb[14].mxu0 %vm55_vm1, %v266_v41 }
  0x3f   :  { %2255 = vmatprep.mubr.msk.f32.mxu0 %vm2772_vm0, %v2773_v1  ;;  %2591 = vmatpush3.bf16.msra.mxu0 %v2590_v61 }
  0x40   :  { %2592 = vmatprep.subr.bf16.mxu0 %v2771_v0 }
  0x42   :  { %2256 = vmatmul.mubr.msk.f32.gmra.mrb[16].mxu0 %vm55_vm1, %v267_v42 }
  0x43   :  { %2258 = vmatprep.mubr.msk.f32.mxu0 %vm2772_vm0, %v2773_v1  ;;  %2594 = vmatpush3.bf16.msra.mxu0 %v2593_v5 }
  0x44   :  { %2607 = vmatprep.subr.bf16.mxu0 %v2771_v0 }
  0x46   :  { %2259 = vmatmul.mubr.msk.f32.gmra.mrb[18].mxu0 %vm55_vm1, %v268_v43  ;;  %v641_v43 = vld [vmem:[#allocation3 + $0x380] sm:$0xff] }
  0x47   :  { %2308 = vmatprep.mubr.msk.f32.mxu0 %vm2772_vm0, %v2773_v1  ;;  %v2596_v48 = vpack.c.bf16 %v642_v44, %v641_v43 }
  0xf5   :  { %v137_v6 = vpop.f32.mrb[0].mxu0  ;;  %v241_v7 = vpop.f32.mrb[0].mxu1 }
  0xf6   :  { %v2194_v8 = vpop.f32.mrb[1].mxu0  ;;  %v242_v9 = vadd.f32 %v241_v7, %v137_v6  ;;  %v2221_v10 = vpop.f32.mrb[1].mxu1  ;;  %v647_v6 = vld [vmem:[#allocation3 + $0x3b0] sm:$0xff]  ;;  %v648_v7 = vld [vmem:[#allocation3 + $0x3b8] sm:$0xff] }
  0xf7   :  { %v2605_v8 = vpack.c.bf16 %v648_v7, %v647_v6 }
  0xf9   :  { %v142_v11 = vpop.f32.mrb[2].mxu0  ;;  %v246_v12 = vpop.f32.mrb[2].mxu1 }
  0xfa   :  { %v2197_v13 = vpop.f32.mrb[3].mxu0  ;;  %v247_v14 = vadd.f32 %v246_v12, %v142_v11  ;;  %v2224_v15 = vpop.f32.mrb[3].mxu1 }
  0xfd   :  { %v147_v16 = vpop.f32.mrb[4].mxu0  ;;  %v251_v18 = vpop.f32.mrb[4].mxu1 }
  0xfe   :  { %v2200_v17 = vpop.f32.mrb[5].mxu0  ;;  %v2227_v19 = vpop.f32.mrb[5].mxu1  ;;  %v904_v18 = vld [vmem:[#allocation3 + $0x10] sm:$0xff] }
  0xff   :  { %v905_v19 = vld [vmem:[#allocation3 + $0x18] sm:$0xff] }
 0x101   :  { %v151_v20 = vpop.f32.mrb[6].mxu0  ;;  %v255_v21 = vpop.f32.mrb[6].mxu1 }
 0x102   :  { %v2203_v22 = vpop.f32.mrb[7].mxu0  ;;  %v256_v23 = vadd.f32 %v255_v21, %v151_v20  ;;  %v2230_v24 = vpop.f32.mrb[7].mxu1  ;;  %v906_v20 = vld [vmem:[#allocation3 + $0x20] sm:$0xff]  ;;  %v2608_v21 = vpack.c.bf16 %v905_v19, %v904_v18 }
 0x103   :  { %v907_v22 = vld [vmem:[#allocation3 + $0x28] sm:$0xff] }
 0x105   :  { %v156_v25 = vpop.f32.mrb[8].mxu0  ;;  %v260_v26 = vpop.f32.mrb[8].mxu1 }
 0x106   :  { %v2206_v27 = vpop.f32.mrb[9].mxu0  ;;  %v261_v28 = vadd.f32 %v260_v26, %v156_v25  ;;  %v2233_v29 = vpop.f32.mrb[9].mxu1 }
 0x109   :  { %v356_v30 = vpop.f32.mrb[10].mxu0 }
 0x10a   :  { %v379_v32 = vadd.f32 %v356_v30, %v242_v9  ;;  %v2248_v33 = vpop.f32.mrb[11].mxu0 }
 0x10c   :  { %v388_v34 = vadd.f32 %v1971_v31, %v379_v32 }
 0x10d   :  { %v361_v35 = vpop.f32.mrb[12].mxu0 }
 0x10e   :  { %v392_v36 = vmax.f32 %v388_v34, 0.0  ;;  %v380_v37 = vadd.f32 %v361_v35, %v247_v14  ;;  %v2251_v38 = vpop.f32.mrb[13].mxu0 }
 0x110   :  { %396 = vst.msk [vmem:[#allocation2 + $0x8] sm:$0xff] %vm29_vm2, %v392_v36  ;;  %v389_v39 = vadd.f32 %v1971_v31, %v380_v37 }
 0x111   :  { %v366_v40 = vpop.f32.mrb[14].mxu0 }
 0x112   :  { %v393_v41 = vmax.f32 %v389_v39, 0.0  ;;  %v2254_v42 = vpop.f32.mrb[15].mxu0 }
 0x114   :  { %397 = vst.msk [vmem:[#allocation2 + $0x10] sm:$0xff] %vm29_vm2, %v393_v41 }
 0x115   :  { %v370_v45 = vpop.f32.mrb[16].mxu0 }
 0x116   :  { %v381_v46 = vadd.f32 %v370_v45, %v256_v23  ;;  %v2257_v47 = vpop.f32.mrb[17].mxu0  ;;  %v2611_v23 = vpack.c.bf16 %v907_v22, %v906_v20 }
 0x117   :  { %v413_v50 = vld [vmem:[#allocation2 + $0x8] sm:$0xff] }
 0x118   :  { %v400_v51 = vld [vmem:[#allocation2 + $0x7] sm:$0xff]  ;;  %v390_v53 = vadd.f32 %v1971_v31, %v381_v46  ;;  %2278 = vmatmul.mubr.msk.f32.vlgmr.msra.gmra.mrb[10].mxu1 %vm29_vm2, %v413_v50  ;;  %v1987_v50 = vld [vmem:[#allocation3 + $0x8] ss:$0 sm:$0xff] }
 0x119   :  { %2309 = vmatmul.mubr.msk.f32.vlgmr.msra.gmra.mrb[20].mxu0 %vm29_vm2, %v400_v51  ;;  %v375_v54 = vpop.f32.mrb[18].mxu0  ;;  %2280 = vmatprep.mubr.msk.f32.mxu1 %vm2772_vm0, %v2773_v1 }
 0x11a   :  { %2311 = vmatprep.mubr.msk.f32.mxu0 %vm2772_vm0, %v2773_v1  ;;  %v394_v55 = vmax.f32 %v390_v53, 0.0  ;;  %v382_v56 = vadd.f32 %v375_v54, %v261_v28  ;;  %v2260_v57 = vpop.f32.mrb[19].mxu0  ;;  %2597 = vmatpush3.bf16.msra.mxu1 %v2596_v48 }
 0x11b   :  { %v414_v60 = vld [vmem:[#allocation2 + $0x10] sm:$0xff]  ;;  %2598 = vmatprep.subr.bf16.mxu1 %v2771_v0  ;;  %2609 = vmatpush3.bf16.msra.mxu0 %v2608_v21 }
 0x11c   :  { %v401_v61 = vld [vmem:[#allocation2 + $0xf] sm:$0xff]  ;;  %398 = vst.msk [vmem:[#allocation2 + $0x20] sm:$0xff] %vm29_vm2, %v394_v55  ;;  %v391_v63 = vadd.f32 %v1971_v31, %v382_v56  ;;  %2281 = vmatmul.mubr.msk.f32.gmra.mrb[12].mxu1 %vm29_vm2, %v414_v60  ;;  %v402_v5 = vld [vmem:[#allocation2 + $0x17] sm:$0xff]  ;;  %2610 = vmatprep.subr.bf16.mxu0 %v2771_v0 }
 0x11d   :  { %2312 = vmatmul.mubr.msk.f32.gmra.mrb[22].mxu0 %vm29_vm2, %v401_v61  ;;  %2283 = vmatprep.mubr.msk.f32.mxu1 %vm2772_vm0, %v2773_v1  ;;  %v636_v13 = vld [vmem:[#allocation2 + $0x9] sm:$0xff]  ;;  %v637_v14 = vld [vmem:[#allocation2 + $0x11] sm:$0xff] }
 0x11e   :  { %2314 = vmatprep.mubr.msk.f32.mxu0 %vm2772_vm0, %v2773_v1  ;;  %v395_v3 = vmax.f32 %v391_v63, 0.0  ;;  %2600 = vmatpush3.bf16.msra.mxu1 %v2599_v58  ;;  %v909_v60 = vld [vmem:[#allocation3 + $0x38] sm:$0xff] }
 0x11f   :  { %2601 = vmatprep.subr.bf16.mxu1 %v2771_v0  ;;  %2612 = vmatpush3.bf16.msra.mxu0 %v2611_v23  ;;  %v2614_v62 = vpack.c.bf16 %v909_v60, %v908_v59 }
 0x120   :  { %399 = vst.msk [vmem:[#allocation2 + $0x28] sm:$0xff] %vm29_vm2, %v395_v3  ;;  %2284 = vmatmul.mubr.msk.f32.gmra.mrb[14].mxu1 %vm29_vm2, %v415_v2  ;;  %2613 = vmatprep.subr.bf16.mxu0 %v2771_v0 }
 0x121   :  { %2315 = vmatmul.mubr.msk.f32.gmra.mrb[24].mxu0 %vm29_vm2, %v402_v5  ;;  %2286 = vmatprep.mubr.msk.f32.mxu1 %vm2772_vm0, %v2773_v1 }
 0x122   :  { %2317 = vmatprep.mubr.msk.f32.mxu0 %vm2772_vm0, %v2773_v1  ;;  %2603 = vmatpush3.bf16.msra.mxu1 %v2602_v4 }
 0x123   :  { %v416_v9 = vld [vmem:[#allocation2 + $0x20] sm:$0xff]  ;;  %2604 = vmatprep.subr.bf16.mxu1 %v2771_v0  ;;  %2615 = vmatpush3.bf16.msra.mxu0 %v2614_v62 }
 0x124   :  { %v403_v10 = vld [vmem:[#allocation2 + $0x1f] sm:$0xff]  ;;  %2287 = vmatmul.mubr.msk.f32.gmra.mrb[16].mxu1 %vm29_vm2, %v416_v9  ;;  %2366 = vmatprep.subr.mxu0 %v2773_v1 }
 0x125   :  { %2318 = vmatmul.mubr.msk.f32.gmra.mrb[26].mxu0 %vm29_vm2, %v403_v10  ;;  %2289 = vmatprep.mubr.msk.f32.mxu1 %vm2772_vm0, %v2773_v1  ;;  %v638_v15 = vld [vmem:[#allocation2 + $0x19] sm:$0xff] }
 0x126   :  { %2320 = vmatprep.mubr.msk.f32.mxu0 %vm2772_vm0, %v2773_v1  ;;  %2606 = vmatpush3.bf16.msra.mxu1 %v2605_v8 }
 0x127   :  { %v417_v11 = vld [vmem:[#allocation2 + $0x28] sm:$0xff]  ;;  %2616 = vmatprep.subr.bf16.mxu1 %v2771_v0 }
 0x128   :  { %v404_v12 = vld [vmem:[#allocation2 + $0x27] sm:$0xff]  ;;  %2290 = vmatmul.mubr.msk.f32.gmra.mrb[18].mxu1 %vm29_vm2, %v417_v11 }
 0x129   :  { %2321 = vmatmul.mubr.msk.f32.gmra.mrb[28].mxu0 %vm29_vm2, %v404_v12  ;;  %2339 = vmatprep.mubr.msk.f32.mxu1 %vm2772_vm0, %v2773_v1  ;;  %v639_v16 = vld [vmem:[#allocation2 + $0x21] sm:$0xff]  ;;  %v640_v17 = vld [vmem:[#allocation2 + $0x29] sm:$0xff] }
 0x12a   :  { %2368 = vmatprep.mubr.msk.f32.mxu0 %vm2772_vm0, %v2773_v1 }
 0x12c   :  { %2340 = vmatmul.mubr.msk.f32.vlgmr.msra.gmra.mrb[20].mxu1 %vm29_vm2, %v636_v13 }
 0x12d   :  { %2342 = vmatprep.mubr.msk.f32.mxu1 %vm2772_vm0, %v2773_v1 }
 0x130   :  { %2343 = vmatmul.mubr.msk.f32.gmra.mrb[22].mxu1 %vm29_vm2, %v637_v14 }
 0x131   :  { %2345 = vmatprep.mubr.msk.f32.mxu1 %vm2772_vm0, %v2773_v1 }
 0x134   :  { %2346 = vmatmul.mubr.msk.f32.gmra.mrb[24].mxu1 %vm29_vm2, %v638_v15 }
 0x135   :  { %2348 = vmatprep.mubr.msk.f32.mxu1 %vm2772_vm0, %v2773_v1 }
 0x138   :  { %2349 = vmatmul.mubr.msk.f32.gmra.mrb[26].mxu1 %vm29_vm2, %v639_v16 }
 0x139   :  { %2351 = vmatprep.mubr.msk.f32.mxu1 %vm2772_vm0, %v2773_v1 }
 0x13c   :  { %2352 = vmatmul.mubr.msk.f32.gmra.mrb[28].mxu1 %vm29_vm2, %v640_v17  ;;  %v910_v17 = vld [vmem:[#allocation3 + $0x40] sm:$0xf] }
 0x13d   :  { %2393 = vmatprep.mubr.msk.f32.mxu1 %vm2772_vm0, %v2773_v1  ;;  %2367 = vmatpush3.msk.msra.mxu0 %vm927_vm6, %v910_v17 }
 0x1eb   :  { %v507_v24 = vpop.f32.mrb[10].mxu1 }
 0x1ec   :  { %v612_v25 = vpop.f32.mrb[20].mxu0  ;;  %v2279_v27 = vpop.f32.mrb[11].mxu1 }
 0x1ed   :  { %v613_v26 = vadd.f32 %v612_v25, %v507_v24  ;;  %v2310_v28 = vpop.f32.mrb[21].mxu0 }
 0x1ef   :  { %v512_v29 = vpop.f32.mrb[12].mxu1 }
 0x1f0   :  { %v617_v30 = vpop.f32.mrb[22].mxu0  ;;  %v2282_v32 = vpop.f32.mrb[13].mxu1 }
 0x1f1   :  { %v618_v31 = vadd.f32 %v617_v30, %v512_v29  ;;  %v2313_v33 = vpop.f32.mrb[23].mxu0 }
 0x1f3   :  { %v517_v34 = vpop.f32.mrb[14].mxu1 }
 0x1f4   :  { %v622_v35 = vpop.f32.mrb[24].mxu0  ;;  %v2285_v37 = vpop.f32.mrb[15].mxu1 }
 0x1f5   :  { %v623_v36 = vadd.f32 %v622_v35, %v517_v34  ;;  %v2316_v38 = vpop.f32.mrb[25].mxu0 }
 0x1f7   :  { %v522_v39 = vpop.f32.mrb[16].mxu1 }
 0x1f8   :  { %v627_v40 = vpop.f32.mrb[26].mxu0  ;;  %v2288_v42 = vpop.f32.mrb[17].mxu1 }
 0x1f9   :  { %v628_v41 = vadd.f32 %v627_v40, %v522_v39  ;;  %v2319_v43 = vpop.f32.mrb[27].mxu0 }
 0x1fb   :  { %v527_v44 = vpop.f32.mrb[18].mxu1 }
 0x1fc   :  { %v632_v45 = vpop.f32.mrb[28].mxu0  ;;  %v2291_v47 = vpop.f32.mrb[19].mxu1 }
 0x1fd   :  { %v633_v46 = vadd.f32 %v632_v45, %v527_v44  ;;  %v2322_v48 = vpop.f32.mrb[29].mxu0 }
 0x1ff   :  { %v730_v49 = vpop.f32.mrb[20].mxu1 }
 0x200   :  { %v754_v51 = vadd.f32 %v730_v49, %v613_v26  ;;  %v2341_v52 = vpop.f32.mrb[21].mxu1 }
 0x202   :  { %v764_v53 = vadd.f32 %v1987_v50, %v754_v51 }
 0x203   :  { %v735_v54 = vpop.f32.mrb[22].mxu1 }
 0x204   :  { %v755_v55 = vadd.f32 %v735_v54, %v618_v31  ;;  %v2344_v56 = vpop.f32.mrb[23].mxu1  ;;  %v769_v57 = vmax.f32 %v764_v53, 0.0 }
 0x206   :  { %v765_v58 = vadd.f32 %v1987_v50, %v755_v55  ;;  %v780_v4 = vrot.slane %v769_v57, 1  ;;  %v800_v5 = vrot.slane %v769_v57, 2  ;;  %v820_v10 = vrot.slane %v769_v57, 3 }
 0x207   :  { %v740_v61 = vpop.f32.mrb[24].mxu1 }
 0x208   :  { %v770_v63 = vmax.f32 %v765_v58, 0.0  ;;  %v756_v2 = vadd.f32 %v740_v61, %v623_v36  ;;  %v2347_v3 = vpop.f32.mrb[25].mxu1 }
 0x20a   :  { %v781_v6 = vrot.slane %v770_v63, 1  ;;  %v801_v7 = vrot.slane %v770_v63, 2  ;;  %v821_v8 = vrot.slane %v770_v63, 3  ;;  %v766_v9 = vadd.f32 %v1987_v50, %v756_v2 }
 0x20b   :  { %v745_v11 = vpop.f32.mrb[26].mxu1 }
 0x20c   :  { %v771_v12 = vmax.f32 %v766_v9, 0.0  ;;  %v757_v13 = vadd.f32 %v745_v11, %v628_v41  ;;  %v2350_v14 = vpop.f32.mrb[27].mxu1  ;;  %v782_v15 = vsel %vm779_vm3, %v780_v4, %v781_v6  ;;  %v802_v16 = vsel %vm799_vm4, %v800_v5, %v801_v7 }
 0x20d   :  { %v794_v18 = vmax.f32 %v769_v57, %v782_v15  ;;  %v822_v19 = vsel %vm819_vm5, %v820_v10, %v821_v8 }
 0x20e   :  { %v783_v20 = vrot.slane %v771_v12, 1  ;;  %v803_v21 = vrot.slane %v771_v12, 2  ;;  %v823_v22 = vrot.slane %v771_v12, 3  ;;  %v767_v23 = vadd.f32 %v1987_v50, %v757_v13 }
 0x20f   :  { %v750_v24 = vpop.f32.mrb[28].mxu1  ;;  %v814_v25 = vmax.f32 %v794_v18, %v802_v16 }
 0x210   :  { %v772_v26 = vmax.f32 %v767_v23, 0.0  ;;  %v758_v27 = vadd.f32 %v750_v24, %v633_v46  ;;  %v2353_v28 = vpop.f32.mrb[29].mxu1  ;;  %v784_v29 = vsel %vm779_vm3, %v781_v6, %v783_v20  ;;  %v804_v30 = vsel %vm799_vm4, %v801_v7, %v803_v21 }
 0x211   :  { %v834_v31 = vmax.f32 %v814_v25, %v822_v19  ;;  %v795_v32 = vmax.f32 %v770_v63, %v784_v29  ;;  %v824_v33 = vsel %vm819_vm5, %v821_v8, %v823_v22  ;;  %v1204_v28 = vld [vmem:[%s3112_s1 + $0x8] sm:$0xff]  ;;  %v1205_v29 = vld [vmem:[%s3112_s1 + $0x10] sm:$0xff] }
 0x212   :  { %v785_v34 = vrot.slane %v772_v26, 1  ;;  %v805_v35 = vrot.slane %v772_v26, 2  ;;  %v825_v36 = vrot.slane %v772_v26, 3  ;;  %v768_v37 = vadd.f32 %v1987_v50, %v758_v27  ;;  %v1203_v27 = vld [vmem:[%s3112_s1] sm:$0xff] }
 0x213   :  { %884 = vrot.lane.b32.xlu1 %v834_v31, %s2774_s0  ;;  %844 = vrot.lane.b32.xlu0 %v834_v31, %s2775_s27  ;;  %v815_v38 = vmax.f32 %v795_v32, %v804_v30  ;;  %v2634_v30 = vpack.c.bf16 %v1204_v28, %v1203_v27  ;;  %v1195_v32 = vld [vmem:[#allocation3 + $0xc0] sm:$0xff]  ;;  %v1347_v28 = vld [vmem:[#allocation3 + $0x128] sm:$0xff] }
 0x214   :  { %v773_v39 = vmax.f32 %v768_v37, 0.0  ;;  %v786_v40 = vsel %vm779_vm3, %v783_v20, %v785_v34  ;;  %v806_v41 = vsel %vm799_vm4, %v803_v21, %v805_v35  ;;  %v826_v42 = vsel %vm819_vm5, %v823_v22, %v825_v36  ;;  %v1198_v37 = vld [vmem:[#allocation3 + $0xd8] sm:$0xff] }
 0x215   :  { %v835_v43 = vmax.f32 %v815_v38, %v824_v33  ;;  %v796_v44 = vmax.f32 %v771_v12, %v786_v40  ;;  %2635 = vmatprep.subr.bf16.mxu0 %v2634_v30  ;;  %v1199_v38 = vld [vmem:[#allocation3 + $0xe0] sm:$0xff]  ;;  %v1201_v40 = vld [vmem:[#allocation3 + $0xf0] sm:$0xff] }
 0x216   :  { %v787_v45 = vrot.slane %v773_v39, 1  ;;  %v807_v46 = vrot.slane %v773_v39, 2  ;;  %v827_v47 = vrot.slane %v773_v39, 3 }
 0x217   :  { %864 = vrot.lane.b32.xlu0 %v834_v31, %s2776_s28  ;;  %846 = vrot.lane.b32.xlu1 %v835_v43, %s2775_s27  ;;  %v816_v48 = vmax.f32 %v796_v44, %v806_v41  ;;  %v1202_v41 = vld [vmem:[#allocation3 + $0xf8] sm:$0xff]  ;;  %v1021_v44 = vld [vmem:[#allocation3 + $0x48] sm:$0xff] }
 0x218   :  { %v788_v49 = vsel %vm779_vm3, %v785_v34, %v787_v45  ;;  %v808_v50 = vsel %vm799_vm4, %v805_v35, %v807_v46  ;;  %v828_v51 = vsel %vm819_vm5, %v825_v36, %v827_v47  ;;  %v798_v56 = vmax.f32 %v773_v39, %v787_v45  ;;  %v1207_v34 = vld [vmem:[%s3112_s1 + $0x20] sm:$0x1]  ;;  %v1197_v36 = vld [vmem:[#allocation3 + $0xd0] sm:$0xff] }
 0x219   :  { %v836_v52 = vmax.f32 %v816_v48, %v826_v42  ;;  %v797_v53 = vmax.f32 %v772_v26, %v788_v49  ;;  %v1196_v35 = vld [vmem:[#allocation3 + $0xc8] sm:$0xff]  ;;  %v1022_v45 = vld [vmem:[#allocation3 + $0x50] sm:$0xff] }
 0x21a   :  { %v818_v57 = vmax.f32 %v798_v56, %v807_v46  ;;  %v1200_v39 = vld [vmem:[#allocation3 + $0xe8] sm:$0xff] }
 0x21b   :  { %866 = vrot.lane.b32.xlu0 %v835_v43, %s2776_s28  ;;  %848 = vrot.lane.b32.xlu1 %v836_v52, %s2775_s27  ;;  %v817_v54 = vmax.f32 %v797_v53, %v808_v50  ;;  %v1023_v53 = vld [vmem:[#allocation3 + $0x58] sm:$0xff] }
 0x21c   :  { %v838_v58 = vmax.f32 %v818_v57, %v827_v47 }
 0x21d   :  { %v837_v55 = vmax.f32 %v817_v54, %v828_v51  ;;  %v1024_v54 = vld [vmem:[#allocation3 + $0x60] sm:$0xff] }
 0x21f   :  { %886 = vrot.lane.b32.xlu0 %v835_v43, %s2774_s0  ;;  %868 = vrot.lane.b32.xlu1 %v836_v52, %s2776_s28 }
 0x223   :  { %888 = vrot.lane.b32.xlu1 %v836_v52, %s2774_s0  ;;  %850 = vrot.lane.b32.xlu0 %v837_v55, %s2775_s27 }
 0x227   :  { %890 = vrot.lane.b32.xlu1 %v837_v55, %s2774_s0  ;;  %870 = vrot.lane.b32.xlu0 %v837_v55, %s2776_s28 }
 0x22b   :  { %872 = vrot.lane.b32.xlu1 %v838_v58, %s2776_s28  ;;  %852 = vrot.lane.b32.xlu0 %v838_v58, %s2775_s27 }
 0x22f   :  { %892 = vrot.lane.b32.xlu0 %v838_v58, %s2774_s0 }
 0x285   :  { %v885_v59 = vpop.permute.xlu1 %884  ;;  %v845_v60 = vpop.permute.xlu0 %844 }
 0x286   :  { %v859_v61 = vmax.f32 %v834_v31, %v845_v60  ;;  %v1206_v31 = vld [vmem:[%s3112_s1 + $0x18] sm:$0xff]  ;;  %v1025_v60 = vld [vmem:[#allocation3 + $0x68] sm:$0x1f]  ;;  %s2777_s1 = smov [#allocation6]  }
 0x287   :  { %v2638_v33 = vpack.c.bf16 %v1206_v31, %v1205_v29  ;;  %v1346_v29 = vld [vmem:[#allocation3 + $0x120] sm:$0xff]  ;;  %s1947_s12 = sshll.u32 %s2777_s1, 4  ;;  %s1948_s12 = int_to_ptr.vmem [resolvable:$true] %s1947_s12 }
 0x288   :  { %s2742_s13 = scalar_lea.vmem %s1948_s12, 32  ;;  %p2747_p9 = scmp.lt.s32.totalorder %s1948_s12, %s1948_s12 }
 0x289   :  { %v865_v62 = vpop.permute.xlu0 %864  ;;  %v847_v63 = vpop.permute.xlu1 %846  ;;  %p2743_p8 = scmp.ne.s32.totalorder %s1948_s12, %s2742_s13  ;;  %p2748_p10 = scmp.lt.s32.totalorder %s2742_s13, %s2742_s13 }
 0x28a   :  { %v879_v2 = vmax.f32 %v859_v61, %v865_v62  ;;  %v860_v6 = vmax.f32 %v835_v43, %v847_v63  ;;  %v1109_v61 = vld [vmem:[#allocation3 + $0x78] sm:$0xff]  ;;  %v1110_v62 = vld [vmem:[#allocation3 + $0x80] sm:$0xff] }
 0x28b   :  { %p2749_p11 = por %p2748_p10, %p2747_p9 }
 0x28c   :  { %v899_v3 = vmax.f32 %v879_v2, %v885_v59 }
 0x28d   :  { %v867_v4 = vpop.permute.xlu0 %866  ;;  %v849_v5 = vpop.permute.xlu1 %848  ;;  %p2750_p12 = pnand %p2749_p11, %p2743_p8 }
 0x28e   :  { %2369 = vmatmul.mubr.msk.f32.vlgmr.msra.gmra.mrb[30].mxu0 %vm911_vm7, %v899_v3  ;;  %v880_v7 = vmax.f32 %v860_v6, %v867_v4  ;;  %v861_v10 = vmax.f32 %v836_v52, %v849_v5  ;;  %v1031_v4 = vld [vmem:[#allocation3 + $0x70] sm:$0x3]  ;;  %v2623_v5 = vpack.c.bf16 %v1110_v62, %v1109_v61  ;;  %v1111_v6 = vld [vmem:[#allocation3 + $0x88] sm:$0xff]  ;;  %v1668_v62 = vld [vmem:[#allocation3 + $0x158] sm:$0xff] }
 0x28f   :  { %2371 = vmatprep.mubr.msk.f32.mxu0 %vm2772_vm0, %v2773_v1  ;;  %2637 = vmatpush3.bf16.msra.mxu0 %v2634_v30 }
 0x290   :  { %2639 = vmatprep.subr.bf16.mxu0 %v2638_v33 }
 0x291   :  { %v887_v8 = vpop.permute.xlu0 %886  ;;  %v869_v9 = vpop.permute.xlu1 %868 }
 0x292   :  { %v900_v11 = vmax.f32 %v880_v7, %v887_v8  ;;  %v881_v12 = vmax.f32 %v861_v10, %v869_v9  ;;  %v1112_v7 = vld [vmem:[#allocation3 + $0x90] sm:$0xff]  ;;  %v1113_v9 = vld [vmem:[#allocation3 + $0x98] sm:$0xff]  ;;  %v1114_v10 = vld [vmem:[#allocation3 + $0xa0] sm:$0xff] }
 0x293   :  { %2641 = vmatpush3.bf16.msra.mxu0 %v2638_v33  ;;  %v2626_v8 = vpack.c.bf16 %v1112_v7, %v1111_v6  ;;  %v1672_v6 = vld [vmem:[#allocation3 + $0x178] sm:$0xff]  ;;  %v1673_v7 = vld [vmem:[#allocation3 + $0x180] sm:$0xff] }
 0x294   :  { %2372 = vmatmul.mubr.msk.f32.gmra.mrb[32].mxu0 %vm911_vm7, %v900_v11  ;;  %2423 = vmatprep.subr.msk.mxu0 %vm1233_vm9, %v1207_v34  ;;  %v2629_v11 = vpack.c.bf16 %v1114_v10, %v1113_v9  ;;  %v1674_v9 = vld [vmem:[#allocation3 + $0x188] sm:$0xff]  ;;  %v1675_v10 = vld [vmem:[#allocation3 + $0x190] sm:$0xff] }
 0x295   :  { %v889_v13 = vpop.permute.xlu1 %888  ;;  %v851_v14 = vpop.permute.xlu0 %850  ;;  %2374 = vmatprep.mubr.msk.f32.mxu0 %vm2772_vm0, %v2773_v1 }
 0x296   :  { %v901_v15 = vmax.f32 %v881_v12, %v889_v13  ;;  %v862_v16 = vmax.f32 %v837_v55, %v851_v14  ;;  %v1115_v12 = vld [vmem:[#allocation3 + $0xa8] sm:$0xff]  ;;  %v1116_v13 = vld [vmem:[#allocation3 + $0xb0] sm:$0xff] }
 0x297   :  { %2424 = vmatpush3.msk.msra.mxu0 %vm1233_vm9, %v1207_v34  ;;  %v2632_v14 = vpack.c.bf16 %v1116_v13, %v1115_v12  ;;  %v1676_v12 = vld [vmem:[#allocation3 + $0x198] sm:$0xff]  ;;  %v1677_v13 = vld [vmem:[#allocation3 + $0x1a0] sm:$0xff] }
 0x298   :  { %2375 = vmatmul.mubr.msk.f32.gmra.mrb[34].mxu0 %vm911_vm7, %v901_v15  ;;  %2456 = vmatprep.subr.mxu0 %v2773_v1  ;;  %v1343_v15 = vld [vmem:[#allocation3 + $0x108] sm:$0xff] }
 0x299   :  { %v891_v17 = vpop.permute.xlu1 %890  ;;  %v871_v18 = vpop.permute.xlu0 %870  ;;  %2377 = vmatprep.mubr.msk.f32.mxu0 %vm2772_vm0, %v2773_v1 }
 0x29a   :  { %v882_v19 = vmax.f32 %v862_v16, %v871_v18  ;;  %v1342_v16 = vld [vmem:[#allocation3 + $0x100] sm:$0xff] }
 0x29c   :  { %v902_v20 = vmax.f32 %v882_v19, %v891_v17 }
 0x29d   :  { %v853_v21 = vpop.permute.xlu0 %852  ;;  %v873_v23 = vpop.permute.xlu1 %872 }
 0x29e   :  { %v863_v22 = vmax.f32 %v838_v58, %v853_v21  ;;  %2378 = vmatmul.mubr.msk.f32.gmra.mrb[36].mxu0 %vm911_vm7, %v902_v20  ;;  %v1345_v21 = vld [vmem:[#allocation3 + $0x118] sm:$0xff] }
 0x29f   :  { %2380 = vmatprep.mubr.msk.f32.mxu0 %vm2772_vm0, %v2773_v1 }
 0x2a0   :  { %v883_v24 = vmax.f32 %v863_v22, %v873_v23  ;;  %v1344_v22 = vld [vmem:[#allocation3 + $0x110] sm:$0xff] }
 0x2a1   :  { %v893_v25 = vpop.permute.xlu0 %892 }
 0x2a2   :  { %v903_v26 = vmax.f32 %v883_v24, %v893_v25 }
 0x2a4   :  { %2381 = vmatmul.mubr.msk.f32.gmra.mrb[38].mxu0 %vm911_vm7, %v903_v26 }
 0x2a5   :  { %2425 = vmatprep.mubr.msk.f32.mxu0 %vm1208_vm8, %v1195_v32 }
 0x2a8   :  { %2426 = vmatmul.mubr.msk.f32.vlgmr.msra.gmra.mrb[40].mxu0 %vm1208_vm8, %v1196_v35  ;;  %v1349_v35 = vld [vmem:[#allocation3 + $0x138] sm:$0xff] }
 0x2a9   :  { %2428 = vmatprep.mubr.msk.f32.mxu0 %vm1208_vm8, %v1197_v36  ;;  %v1348_v36 = vld [vmem:[#allocation3 + $0x130] sm:$0xff] }
 0x2ac   :  { %2429 = vmatmul.mubr.msk.f32.gmra.mrb[42].mxu0 %vm1208_vm8, %v1198_v37 }
 0x2ad   :  { %2431 = vmatprep.mubr.msk.f32.mxu0 %vm1208_vm8, %v1199_v38 }
 0x2b0   :  { %2432 = vmatmul.mubr.msk.f32.gmra.mrb[44].mxu0 %vm1208_vm8, %v1200_v39 }
 0x2b1   :  { %2434 = vmatprep.mubr.msk.f32.mxu0 %vm1208_vm8, %v1201_v40 }
 0x2b4   :  { %2435 = vmatmul.mubr.msk.f32.gmra.mrb[46].mxu0 %vm1208_vm8, %v1202_v41 }
 0x2b5   :  { %2458 = vmatprep.mubr.msk.f32.mxu0 %vm2772_vm0, %v2773_v1 }
 0x361   :  { %v997_v42 = vpop.f32.mrb[30].mxu0 }
 0x362   :  { %v2370_v43 = vpop.f32.mrb[31].mxu0  ;;  %v1026_v47 = vmul.f32 %v1021_v44, %v997_v42 }
 0x367   :  { %v1002_v46 = vpop.f32.mrb[32].mxu0 }
 0x368   :  { %v1027_v48 = vmul.f32 %v1022_v45, %v1002_v46  ;;  %v2373_v49 = vpop.f32.mrb[33].mxu0  ;;  %v1996_v45 = vld [vmem:[#allocation3 + $0xb8] ss:$0 sm:$0xff] }
 0x36a   :  { %v2617_v50 = vpack.c.bf16 %v1027_v48, %v1026_v47 }
 0x36b   :  { %v1007_v51 = vpop.f32.mrb[34].mxu0 }
 0x36c   :  { %v2376_v52 = vpop.f32.mrb[35].mxu0  ;;  %2618 = vmatpush3.bf16.msra.mxu1 %v2617_v50  ;;  %v1028_v56 = vmul.f32 %v1023_v53, %v1007_v51  ;;  %v1515_v53 = vld [vmem:[#allocation3 + $0x140] sm:$0xff] }
 0x36d   :  { %2619 = vmatprep.subr.bf16.mxu1 %v2771_v0  ;;  %v1438_v52 = vld [vmem:[#allocation3 + $0x150] sm:$0xff] }
 0x36e   :  { %2457 = vmatpush3.msra.mxu0 %v1438_v52  ;;  %v1850_v52 = vld [vmem:[#allocation3 + $0x240] sm:$0xff] }
 0x36f   :  { %2466 = vmatprep.subr.mxu0 %v2773_v1 }
 0x371   :  { %v1012_v55 = vpop.f32.mrb[36].mxu0 }
 0x372   :  { %v1029_v57 = vmul.f32 %v1024_v54, %v1012_v55  ;;  %v2379_v58 = vpop.f32.mrb[37].mxu0 }
 0x374   :  { %v2620_v59 = vpack.c.bf16 %v1029_v57, %v1028_v56 }
 0x376   :  { %2621 = vmatpush3.bf16.msra.mxu1 %v2620_v59  ;;  %v1593_v59 = vld [vmem:[#allocation3 + $0x148] sm:$0xff] }
 0x377   :  { %v1017_v63 = vpop.f32.mrb[38].mxu0  ;;  %2391 = vmatprep.subr.mxu1 %v2773_v1 }
 0x378   :  { %v1030_v2 = vmul.f32 %v1025_v60, %v1017_v63  ;;  %v2382_v3 = vpop.f32.mrb[39].mxu0  ;;  %v1669_v63 = vld [vmem:[#allocation3 + $0x160] sm:$0xff] }
 0x379   :  { %v2655_v3 = vpack.c.bf16 %v1669_v63, %v1668_v62  ;;  %v2015_v63 = vld [vmem:[#allocation3 + $0x268] ss:$0 sm:$0xff] }
 0x37a   :  { %2392 = vmatpush3.msk.msra.mxu1 %vm819_vm5, %v1030_v2  ;;  %v1670_v2 = vld [vmem:[#allocation3 + $0x168] sm:$0xff] }
 0x37b   :  { %2394 = vmatmul.mubr.msk.f32.vlgmr.msra.gmra.mrb[30].mxu1 %vm1032_vm10, %v1031_v4  ;;  %2622 = vmatprep.subr.bf16.mxu1 %v2771_v0  ;;  %v2427_v17 = vpop.f32.mrb[40].mxu0  ;;  %v1671_v4 = vld [vmem:[#allocation3 + $0x170] sm:$0xff] }
 0x37c   :  { %2624 = vmatpush3.bf16.msra.mxu1 %v2623_v5  ;;  %2412 = vmatprep.mubr.msk.f32.mxu1 %vm2772_vm0, %v2773_v1  ;;  %v1351_v18 = vmul.f32 %v2427_v17, %v1343_v15  ;;  %v1303_v19 = vpop.f32.mrb[41].mxu0  ;;  %v2658_v5 = vpack.c.bf16 %v1671_v4, %v1670_v2  ;;  %v1678_v15 = vld [vmem:[#allocation3 + $0x1a8] sm:$0xff] }
 0x37d   :  { %2625 = vmatprep.subr.bf16.mxu1 %v2771_v0  ;;  %v1350_v20 = vmul.f32 %v1342_v16, %v1303_v19  ;;  %v1679_v16 = vld [vmem:[#allocation3 + $0x1b0] sm:$0xff]  ;;  %v1681_v19 = vld [vmem:[#allocation3 + $0x1c0] sm:$0xff] }
 0x37e   :  { %v2670_v17 = vpack.c.bf16 %v1679_v16, %v1678_v15 }
 0x37f   :  { %v2643_v23 = vpack.c.bf16 %v1351_v18, %v1350_v20  ;;  %v2430_v24 = vpop.f32.mrb[42].mxu0  ;;  %v1680_v18 = vld [vmem:[#allocation3 + $0x1b8] sm:$0xff] }
 0x380   :  { %2627 = vmatpush3.bf16.msra.mxu1 %v2626_v8  ;;  %v1353_v25 = vmul.f32 %v2430_v24, %v1345_v21  ;;  %v1313_v26 = vpop.f32.mrb[43].mxu0  ;;  %v2661_v8 = vpack.c.bf16 %v1673_v7, %v1672_v6  ;;  %v2673_v20 = vpack.c.bf16 %v1681_v19, %v1680_v18  ;;  %v1682_v21 = vld [vmem:[#allocation3 + $0x1c8] sm:$0xff] }
 0x381   :  { %2628 = vmatprep.subr.bf16.mxu1 %v2771_v0  ;;  %v1352_v27 = vmul.f32 %v1344_v22, %v1313_v26  ;;  %v1683_v22 = vld [vmem:[#allocation3 + $0x1d0] sm:$0xff] }
 0x383   :  { %v2646_v30 = vpack.c.bf16 %v1353_v25, %v1352_v27  ;;  %v2433_v31 = vpop.f32.mrb[44].mxu0 }
 0x384   :  { %2630 = vmatpush3.bf16.msra.mxu1 %v2629_v11  ;;  %v1355_v32 = vmul.f32 %v2433_v31, %v1347_v28  ;;  %v1323_v33 = vpop.f32.mrb[45].mxu0  ;;  %v2664_v11 = vpack.c.bf16 %v1675_v10, %v1674_v9  ;;  %v1760_v28 = vld [vmem:[#allocation3 + $0x1e0] sm:$0xff] }
 0x385   :  { %2631 = vmatprep.subr.bf16.mxu1 %v2771_v0  ;;  %v1354_v34 = vmul.f32 %v1346_v29, %v1323_v33  ;;  %v1761_v29 = vld [vmem:[#allocation3 + $0x1e8] sm:$0xff] }
 0x386   :  { %v2679_v31 = vpack.c.bf16 %v1761_v29, %v1760_v28 }
 0x387   :  { %v2649_v37 = vpack.c.bf16 %v1355_v32, %v1354_v34  ;;  %v2436_v38 = vpop.f32.mrb[46].mxu0  ;;  %v1763_v32 = vld [vmem:[#allocation3 + $0x1f8] sm:$0xff]  ;;  %v1764_v34 = vld [vmem:[#allocation3 + $0x200] sm:$0xff] }
 0x388   :  { %2633 = vmatpush3.bf16.msra.mxu1 %v2632_v14  ;;  %v1357_v39 = vmul.f32 %v2436_v38, %v1349_v35  ;;  %v1333_v40 = vpop.f32.mrb[47].mxu0  ;;  %v2667_v14 = vpack.c.bf16 %v1677_v13, %v1676_v12  ;;  %v1765_v35 = vld [vmem:[#allocation3 + $0x208] sm:$0xff] }
 0x389   :  { %2642 = vmatprep.subr.bf16.mxu1 %v2771_v0  ;;  %v1356_v41 = vmul.f32 %v1348_v36, %v1333_v40  ;;  %v2685_v36 = vpack.c.bf16 %v1765_v35, %v1764_v34  ;;  %v1767_v40 = vld [vmem:[#allocation3 + $0x218] sm:$0xff] }
 0x38b   :  { %v2652_v42 = vpack.c.bf16 %v1357_v39, %v1356_v41  ;;  %v1766_v39 = vld [vmem:[#allocation3 + $0x210] sm:$0xff] }
 0x38c   :  { %v2688_v41 = vpack.c.bf16 %v1767_v40, %v1766_v39 }
 0x44e   :  { %v3056_v43 = vpop.f32.mrb[30].mxu1 }
 0x44f   :  { %2413 = vmatmul.mubr.msk.f32.vlgmr.msra.gmra.mrb[32].mxu1 %vm29_vm2, %v3056_v43  ;;  %v2395_v44 = vpop.f32.mrb[31].mxu1 }
 0x450   :  { %2644 = vmatpush3.bf16.msra.mxu1 %v2643_v23  ;;  %2453 = vmatprep.mubr.msk.f32.mxu1 %vm2772_vm0, %v2773_v1  ;;  %v2676_v23 = vpack.c.bf16 %v1683_v22, %v1682_v21  ;;  %v1847_v44 = vld [vmem:[#allocation3 + $0x228] sm:$0xff] }
 0x451   :  { %2645 = vmatprep.subr.bf16.mxu1 %v2771_v0 }
 0x454   :  { %2647 = vmatpush3.bf16.msra.mxu1 %v2646_v30  ;;  %v1762_v30 = vld [vmem:[#allocation3 + $0x1f0] sm:$0xff] }
 0x455   :  { %2648 = vmatprep.subr.bf16.mxu1 %v2771_v0  ;;  %v2682_v33 = vpack.c.bf16 %v1763_v32, %v1762_v30 }
 0x458   :  { %2650 = vmatpush3.bf16.msra.mxu1 %v2649_v37 }
 0x459   :  { %2651 = vmatprep.subr.bf16.mxu1 %v2771_v0 }
 0x45c   :  { %2653 = vmatpush3.bf16.msra.mxu1 %v2652_v42  ;;  %v2012_v42 = vld [vmem:[#allocation3 + $0x1d8] ss:$0 sm:$0xff] }
 0x45d   :  { %2461 = vmatprep.subr.mxu1 %v2773_v1 }
 0x522   :  { %v1191_v46 = vpop.f32.mrb[32].mxu1 }
 0x523   :  { %v1192_v47 = vadd.f32 %v1996_v45, %v1191_v46  ;;  %v2414_v48 = vpop.f32.mrb[33].mxu1  ;;  %v1848_v45 = vld [vmem:[#allocation3 + $0x230] sm:$0xff] }
 0x525   :  { %2454 = vmatmul.mubr.msk.f32.vlgmr.msra.gmra.mrb[34].mxu1 %vm29_vm2, %v1192_v47 }
 0x526   :  { %2462 = vmatpush3.msk.msra.mxu1 %vm1520_vm11, %v1192_v47  ;;  %2463 = vmatprep.mubr.msk.f32.mxu1 %vm2772_vm0, %v2773_v1 }
 0x527   :  { %2654 = vmatprep.subr.bf16.mxu1 %v2771_v0 }
 0x529   :  { %2464 = vmatmul.mubr.msk.f32.vlgmr.msra.gmra.mrb[36].mxu1 %vm1516_vm13, %v1515_v53 }
 0x52a   :  { %2503 = vmatprep.mubr.msk.f32.mxu1 %vm2772_vm0, %v2773_v1  ;;  %2656 = vmatpush3.bf16.msra.mxu1 %v2655_v3 }
 0x52b   :  { %2657 = vmatprep.subr.bf16.mxu1 %v2771_v0 }
 0x52e   :  { %2659 = vmatpush3.bf16.msra.mxu1 %v2658_v5 }
 0x52f   :  { %2660 = vmatprep.subr.bf16.mxu1 %v2771_v0 }
 0x532   :  { %2662 = vmatpush3.bf16.msra.mxu1 %v2661_v8 }
 0x533   :  { %2663 = vmatprep.subr.bf16.mxu1 %v2771_v0 }
 0x536   :  { %2665 = vmatpush3.bf16.msra.mxu1 %v2664_v11 }
 0x537   :  { %2666 = vmatprep.subr.bf16.mxu1 %v2771_v0 }
 0x53a   :  { %2668 = vmatpush3.bf16.msra.mxu1 %v2667_v14 }
 0x53b   :  { %2669 = vmatprep.subr.bf16.mxu1 %v2771_v0 }
 0x53e   :  { %2671 = vmatpush3.bf16.msra.mxu1 %v2670_v17 }
 0x53f   :  { %2672 = vmatprep.subr.bf16.mxu1 %v2771_v0 }
 0x542   :  { %2674 = vmatpush3.bf16.msra.mxu1 %v2673_v20 }
 0x543   :  { %2675 = vmatprep.subr.bf16.mxu1 %v2771_v0 }
 0x546   :  { %2677 = vmatpush3.bf16.msra.mxu1 %v2676_v23 }
 0x5f8   :  { %v1427_v49 = vpop.f32.mrb[34].mxu1 }
 0x5f9   :  { %v1432_v50 = vsel %vm1431_vm12, %v1427_v49, -inf  ;;  %v2455_v51 = vpop.f32.mrb[35].mxu1 }
 0x5fa   :  { %1433 = vmax.xlane.f32.xlu1 %v1432_v50  ;;  %v1849_v51 = vld [vmem:[#allocation3 + $0x238] sm:$0xff] }
 0x5fb   :  { %v2694_v53 = vpack.c.bf16 %v1850_v52, %v1849_v51 }
 0x5fc   :  { %v1589_v58 = vpop.f32.mrb[36].mxu1 }
 0x5fd   :  { %v2465_v60 = vpop.f32.mrb[37].mxu1  ;;  %v1594_v61 = vmul.f32 %v1593_v59, %v1589_v58  ;;  %v2013_v59 = vld [vmem:[#allocation3 + $0x220] ss:$0 sm:$0xff] }
 0x687   :  { %v1434_v54 = vpop.xlane.xlu1 %1433 }
 0x688   :  { %v1435_v55 = vsub.f32 %v1427_v49, %v1434_v54  ;;  %v2691_v49 = vpack.c.bf16 %v1848_v45, %v1847_v44  ;;  %v1851_v54 = vld [vmem:[#allocation3 + $0x248] sm:$0xff] }
 0x68a   :  { %v1436_v56 = vmul.f32 1.442695, %v1435_v55  ;;  %v1852_v55 = vld [vmem:[#allocation3 + $0x250] sm:$0xff] }
 0x68c   :  { %2712 = vpow2.f32 %v1436_v56  ;;  %v2697_v56 = vpack.c.bf16 %v1852_v55, %v1851_v54 }
 0x696   :  { %v2713_v57 = vpop.eup %2712 }
 0x697   :  { %2459 = vmatmul.mubr.msk.f32.vlgmr.msra.gmra.mrb[48].mxu0 %vm1439_vm14, %v2713_v57 }
 0x698   :  { %2468 = vmatprep.mubr.msk.f32.mxu0 %vm2772_vm0, %v2773_v1  ;;  %2467 = vmatpush3.msra.mxu0 %v1594_v61 }
 0x699   :  { %2678 = vmatprep.subr.bf16.mxu0 %v2771_v0 }
 0x76a   :  { %v1509_v24 = vpop.f32.mrb[48].mxu0 }
 0x76b   :  { %2714 = vrcp.f32 %v1509_v24  ;;  %v2460_v25 = vpop.f32.mrb[49].mxu0 }
 0x775   :  { %v2715_v26 = vpop.eup %2714 }
 0x776   :  { %v1514_v27 = vmul.f32 %v2715_v26, %v2713_v57  ;;  %v1854_v57 = vld [vmem:[#allocation3 + $0x260] sm:$0xff] }
 0x778   :  { %2469 = vmatmul.mubr.msk.f32.vlgmr.msra.gmra.mrb[50].mxu0 %vm1439_vm14, %v1514_v27 }
 0x779   :  { %2522 = vmatprep.mubr.msk.f32.mxu0 %vm2772_vm0, %v2773_v1  ;;  %2680 = vmatpush3.bf16.msra.mxu0 %v2679_v31 }
 0x77a   :  { %2681 = vmatprep.subr.bf16.mxu0 %v2771_v0 }
 0x77d   :  { %2683 = vmatpush3.bf16.msra.mxu0 %v2682_v33 }
 0x77e   :  { %2684 = vmatprep.subr.bf16.mxu0 %v2771_v0 }
 0x781   :  { %2686 = vmatpush3.bf16.msra.mxu0 %v2685_v36 }
 0x782   :  { %2687 = vmatprep.subr.bf16.mxu0 %v2771_v0 }
 0x785   :  { %2689 = vmatpush3.bf16.msra.mxu0 %v2688_v41 }
 0x786   :  { %2690 = vmatprep.subr.bf16.mxu0 %v2771_v0 }
 0x84b   :  { %v1664_v37 = vpop.f32.mrb[50].mxu0 }
 0x84c   :  { %v2470_v38 = vpop.f32.mrb[51].mxu0  ;;  %2504 = vmatmul.mubr.f32.vlgmr.msra.gmra.mrb[38].mxu1 %v1664_v37 }
 0x91f   :  { %v1755_v46 = vpop.f32.mrb[38].mxu1 }
 0x920   :  { %v1756_v47 = vadd.f32 %v2012_v42, %v1755_v46  ;;  %v2505_v48 = vpop.f32.mrb[39].mxu1 }
 0x922   :  { %v1759_v50 = vadd.f32 %v1756_v47, %v3056_v43  ;;  %v1853_v43 = vld [vmem:[#allocation3 + $0x258] sm:$0xff] }
 0x923   :  { %v2700_v58 = vpack.c.bf16 %v1854_v57, %v1853_v43 }
 0x924   :  { %2523 = vmatmul.mubr.msk.f32.vlgmr.msra.gmra.mrb[52].mxu0 %vm29_vm2, %v1759_v50 }
 0x925   :  { %2692 = vmatpush3.bf16.msra.mxu0 %v2691_v49  ;;  %2541 = vmatprep.mubr.msk.f32.mxu0 %vm2772_vm0, %v2773_v1 }
 0x926   :  { %2693 = vmatprep.subr.bf16.mxu0 %v2771_v0 }
 0x929   :  { %2695 = vmatpush3.bf16.msra.mxu0 %v2694_v53 }
 0x92a   :  { %2696 = vmatprep.subr.bf16.mxu0 %v2771_v0 }
 0x92d   :  { %2698 = vmatpush3.bf16.msra.mxu0 %v2697_v56 }
 0x92e   :  { %2699 = vmatprep.subr.bf16.mxu0 %v2771_v0 }
 0x931   :  { %2701 = vmatpush3.bf16.msra.mxu0 %v2700_v58 }
 0x9f7   :  { %v1842_v60 = vpop.f32.mrb[52].mxu0 }
 0x9f8   :  { %v1843_v61 = vadd.f32 %v2013_v59, %v1842_v60  ;;  %v2524_v62 = vpop.f32.mrb[53].mxu0 }
 0x9fa   :  { %v1846_v1 = vmax.f32 %v1843_v61, 0.0 }
 0x9fc   :  { %2542 = vmatmul.mubr.msk.f32.vlgmr.msra.gmra.mrb[54].mxu0 %vm29_vm2, %v1846_v1 }
 0xacf   :  { %v1929_v2 = vpop.f32.mrb[54].mxu0 }
 0xad0   :  { %v1930_v3 = vadd.f32 %v2015_v63, %v1929_v2  ;;  %v2543_v4 = vpop.f32.mrb[55].mxu0 }
 0xad2   :  { %v2017_v5 = vmul.f32 -1.442695, %v1930_v3 }
 0xad4   :  { %2716 = vpow2.f32 %v2017_v5 }
 0xade   :  { %v2717_v6 = vpop.eup %2716 }
 0xadf   :  { %v1936_v7 = vadd.f32 1.0, %v2717_v6 }
 0xae1   :  { %2718 = vrcp.f32 %v1936_v7 }
 0xaeb   :  { %v2719_v0 = vpop.eup %2718 }
 0xaec   :  { %1940 = vst.msk [vmem:[#allocation6] sm:$0x3] %vm1939_vm15, %v2719_v0 }
 0xaed   :  { %2753 = shalt.err (!%p2750_p12)
}
 0xaee   :  { %s2754_s16 = scalar_lea.hbm %s3114_s3, 32 }
 0xaef   :  { %p2755_p13 = scmp.ne.s32.totalorder %s3114_s3, %s2754_s16  ;;  %p2758_p0 = scmp.lt.u32.totalorder %s2754_s16, %s3114_s3 }
 0xaf1   :  { %p2760_p1 = pnand %p2758_p0, %p2755_p13 }
 0xaf3   :  { %2763 = shalt.err (!%p2760_p1)
}
 0xaf4   :  { %1950 = dma.vmem_to_hbm [thread:$0]  %s1948_s12, 32, %s3114_s3, [#allocation5]  }
 0xaf5   :  { %2766 = dma.done.wait [#allocation5], 32  }
 0xaf6   :  { %2767 = vsyncadd [#allocation5], 4294967264 }
 0xaf7   :  { %1954 = vsyncpa [#allocation4], 1 }
 0xaf8   :  { %1955 = vsyncpa [#allocation5], 1 }

</bundles_post_ra>
